<compile_context>
chip_gen: v6e
topology: v6e:2x2x1
jax: 0.10.0
libtpu: 0.0.40
codegen_flags: <defaults>
</compile_context>

<pallas_src>
import functools

import jax
import jax.numpy as jnp
from jax.experimental import pallas as pl
from jax.experimental.pallas import tpu as pltpu

LN_EPS = 1e-5                 # nn.LayerNorm default


# ----------------------------------------------------------------------------
# helpers
# ----------------------------------------------------------------------------
def _layernorm(x, g, b):
    mu = jnp.mean(x, axis=-1, keepdims=True)
    var = jnp.mean((x - mu) ** 2, axis=-1, keepdims=True)
    return (x - mu) * jax.lax.rsqrt(var + LN_EPS) * g + b


def _gelu_exact(x):
    # nn.GELU() default = exact erf formulation
    return 0.5 * x * (1.0 + jax.lax.erf(x * (1.0 / (2.0 ** 0.5))))


def _pick_tile(dim, target, mult):
    """Largest tile <= target that divides `dim` and is a multiple of `mult`.
    Falls back to the full dim (always a legal Pallas block)."""
    if dim <= target:
        return dim
    t = (target // mult) * mult
    while t >= mult:
        if dim % t == 0:
            return t
        t -= mult
    return dim


def _hw_vmem_bytes():
    """Physical VMEM capacity; conservative 64 MiB fallback (v7x-sized)."""
    try:
        return int(getattr(pltpu.get_tpu_info(), "vmem_capacity_bytes", 0)) or (64 << 20)
    except Exception:
        return 64 << 20


# ----------------------------------------------------------------------------
# kernel 1: LayerNorm1 + fused QKV projection, head-major q/k/v outputs
# ----------------------------------------------------------------------------
def _ln_qkv_kernel(x_ref, g_ref, b_ref, w_ref, bias_ref, q_ref, k_ref, v_ref,
                   *, num_heads):
    H = x_ref.shape[-1]
    hd = H // num_heads
    x = x_ref[...].astype(jnp.float32)                       # f32 LN stats
    xn = _layernorm(x, g_ref[...], b_ref[...])
    qkv = jnp.dot(xn.astype(w_ref.dtype), w_ref[...],        # (TQ, 3H) on MXU
                  preferred_element_type=jnp.float32) + bias_ref[...]
    # Head split done here, once per element, so kernel 2 reads head-major
    # (NH, TQ, hd) blocks straight from HBM (no XLA transpose round trip).
    for h in range(num_heads):
        q_ref[h] = qkv[:, h * hd:(h + 1) * hd].astype(q_ref.dtype)
        k_ref[h] = qkv[:, H + h * hd:H + (h + 1) * hd].astype(k_ref.dtype)
        v_ref[h] = qkv[:, 2 * H + h * hd:2 * H + (h + 1) * hd].astype(v_ref.dtype)


# ----------------------------------------------------------------------------
# kernel 2: flash attention (heads batched) + fused out-proj + residual 1
# ----------------------------------------------------------------------------
def _flash_attn_kernel(q_ref, k_ref, v_ref, x_ref, wo_ref, bo_ref, y1_ref,
                       m_sc, l_sc, acc_sc, *, num_heads, exp_dtype, exact_div):
    ki = pl.program_id(2)

    @pl.when(ki == 0)
    def _init():
        m_sc[...] = jnp.full_like(m_sc, -jnp.inf)
        l_sc[...] = jnp.zeros_like(l_sc)
        acc_sc[...] = jnp.zeros_like(acc_sc)

    # (NH, TQ, hd) x (NH, TK, hd) -> (NH, TQ, TK): one batched MXU stream.
    # 1/sqrt(hd) already folded into the Q projection weights.
    s = jnp.einsum("hqd,hkd->hqk", q_ref[...], k_ref[...],
                   preferred_element_type=jnp.float32)

    m_prev = m_sc[...]
    m_new = jnp.maximum(m_prev, jnp.max(s, axis=-1, keepdims=True))
    alpha = jnp.exp(m_prev - m_new)                           # f32 bookkeeping
    # Exponentials in exp_dtype: bf16 on the mixed-precision path (args <= 0
    # after max subtraction -> numerically benign; ~2x EUP rate on v6e/v7x).
    p = jnp.exp((s - m_new).astype(exp_dtype))
    l_sc[...] = alpha * l_sc[...] + jnp.sum(p.astype(jnp.float32),
                                            axis=-1, keepdims=True)
    acc_sc[...] = alpha * acc_sc[...] + jnp.einsum(
        "hqk,hkd->hqd", p.astype(v_ref.dtype), v_ref[...],
        preferred_element_type=jnp.float32)
    m_sc[...] = m_new

    @pl.when(ki == pl.num_programs(2) - 1)
    def _finalize():
        l = l_sc[...]
        if exact_div:
            o = acc_sc[...] / l                               # exact on f32 path
        else:
            r = pl.reciprocal(l, approx=True)                 # EUP slot
            r = r * (2.0 - l * r)                             # one Newton step
            o = acc_sc[...] * r
        o = o.astype(wo_ref.dtype)                            # (NH, TQ, hd)
        # Fused output projection: sum_h o_h @ Wo[h] -> lane-dense (TQ, H) store.
        proj = jnp.dot(o[0], wo_ref[0], preferred_element_type=jnp.float32)
        for h in range(1, num_heads):
            proj = proj + jnp.dot(o[h], wo_ref[h],
                                  preferred_element_type=jnp.float32)
        y1 = x_ref[...].astype(jnp.float32) + proj + bo_ref[...]   # residual 1
        y1_ref[...] = y1.astype(y1_ref.dtype)


# ----------------------------------------------------------------------------
# kernel 3: LN2 + tiled FFN + residual 2
# ----------------------------------------------------------------------------
def _ln2_ffn_kernel(y1_ref, g2_ref, bt2_ref, w1_ref, b1_ref, w2_ref, b2_ref,
                    y_ref, xn2_sc, acc_sc):
    f = pl.program_id(2)

    @pl.when(f == 0)
    def _init():
        y1 = y1_ref[...].astype(jnp.float32)
        # LN2 output rounded once to the compute dtype (mixed-precision policy).
        xn2_sc[...] = _layernorm(y1, g2_ref[...], bt2_ref[...]).astype(xn2_sc.dtype)
        acc_sc[...] = jnp.zeros_like(acc_sc)

    # FFN tiled over the 4H intermediate axis: w1 column tile, w2 row tile,
    # f32 accumulator across the 'arbitrary' grid axis.
    h = jnp.dot(xn2_sc[...], w1_ref[...],
                preferred_element_type=jnp.float32) + b1_ref[...]
    h = _gelu_exact(h)                                        # f32 elementwise
    acc_sc[...] += jnp.dot(h.astype(w2_ref.dtype), w2_ref[...],
                           preferred_element_type=jnp.float32)

    @pl.when(f == pl.num_programs(2) - 1)
    def _fin():
        y_ref[...] = (y1_ref[...].astype(jnp.float32) + acc_sc[...]
                      + b2_ref[...]).astype(y_ref.dtype)


# ----------------------------------------------------------------------------
# one-time weight preprocessing (hoisted out of the per-call path)
# ----------------------------------------------------------------------------
def prepare_params(params, num_heads, compute_dtype=jnp.bfloat16):
    """Fold 1/sqrt(hd) into Wq, fuse q/k/v into one (H, 3H) matmul, reshape Wo
    to head-major (NH, hd, H) for the fused out-projection, and cast the big
    matrices to the MXU compute dtype.  Call once at parameter-load time."""
    (ln1_g, ln1_b, wq, wk, wv, bq, bk, bv, wo, bo,
     ln2_g, ln2_b, w1, b1, w2, b2) = params
    H = wq.shape[0]
    assert H % num_heads == 0, "hidden_size must be divisible by num_heads"
    hd = H // num_heads
    scale = hd ** -0.5
    wqkv = jnp.concatenate([wq * scale, wk, wv], axis=1).astype(compute_dtype)
    bqkv = jnp.concatenate([bq * scale, bk, bv], axis=1).astype(jnp.float32)
    wo_r = wo.reshape(num_heads, hd, H).astype(compute_dtype)
    return (ln1_g.astype(jnp.float32), ln1_b.astype(jnp.float32),
            wqkv, bqkv, wo_r, bo.astype(jnp.float32),
            ln2_g.astype(jnp.float32), ln2_b.astype(jnp.float32),
            w1.astype(compute_dtype), b1.astype(jnp.float32),
            w2.astype(compute_dtype), b2.astype(jnp.float32))


# ----------------------------------------------------------------------------
# wrapper
# ----------------------------------------------------------------------------
@functools.partial(jax.jit, static_argnums=(2,))
def transformer_block(x, prep, num_heads):
    (ln1_g, ln1_b, wqkv, bqkv, wo_r, bo, ln2_g, ln2_b, w1, b1, w2, b2) = prep
    B, S, H = x.shape
    F4 = w1.shape[1]
    hd = H // num_heads
    compute_dtype = wqkv.dtype
    f32_path = compute_dtype == jnp.float32

    # ---- generation-aware tiling / VMEM budget -----------------------------
    vmem_cap = _hw_vmem_bytes()
    if vmem_cap >= (100 << 20):          # v5e / v6e: 128 MiB physical VMEM
        vmem_limit = 96 << 20
        tk_target, tf_target = 1024, 1024
    else:                                # v7x-sized: 64 MiB physical VMEM
        vmem_limit = 48 << 20
        tk_target = 256
        tf_target = 256 if H >= 2048 else 512
    vmem_limit = min(vmem_limit, vmem_cap * 3 // 4)

    TQ = _pick_tile(S, 256, 16)          # bf16 sublane pack (16 rows)
    TK = _pick_tile(S, tk_target, 128)   # lane-dense score tiles
    TF = _pick_tile(F4, tf_target, 128)

    # v7x has 2 TensorCores: keep >= 2 iterations on the 'parallel' axes.
    if B * (S // TQ) < 2:
        for cand in (TQ // 2, TQ // 4):
            if cand >= 16 and cand % 16 == 0 and S % cand == 0:
                TQ = cand
                break

    def cparams(sem):
        return pltpu.CompilerParams(dimension_semantics=sem,
                                    vmem_limit_bytes=vmem_limit)

    def resident(shape):
        # Constant-index weight/bias blocks are revisited every grid step:
        # single-buffer them so default double-buffering doesn't duplicate
        # multi-MiB weights in VMEM (critical for v7x at H >= 2048).
        nd = len(shape)
        return pl.BlockSpec(shape, lambda *idx: (0,) * nd,
                            pipeline_mode=pl.Buffered(1))

    # ---- kernel 1: LN1 + fused QKV, head-major q/k/v outputs ---------------
    qkv_out = jax.ShapeDtypeStruct((B, num_heads, S, hd), compute_dtype)
    q, k, v = pl.pallas_call(
        functools.partial(_ln_qkv_kernel, num_heads=num_heads),
        out_shape=(qkv_out, qkv_out, qkv_out),
        grid_spec=pltpu.PrefetchScalarGridSpec(
            num_scalar_prefetch=0,
            grid=(B, S // TQ),
            in_specs=[
                pl.BlockSpec((pl.Squeezed(), TQ, H), lambda b, i: (b, i, 0)),
                resident((1, H)),                 # ln1 gamma
                resident((1, H)),                 # ln1 beta
                resident((H, 3 * H)),             # fused QKV weight (1 buffer)
                resident((1, 3 * H)),             # fused QKV bias
            ],
            out_specs=(
                pl.BlockSpec((pl.Squeezed(), num_heads, TQ, hd),
                             lambda b, i: (b, 0, i, 0)),
                pl.BlockSpec((pl.Squeezed(), num_heads, TQ, hd),
                             lambda b, i: (b, 0, i, 0)),
                pl.BlockSpec((pl.Squeezed(), num_heads, TQ, hd),
                             lambda b, i: (b, 0, i, 0)),
            ),
        ),
        compiler_params=cparams(("parallel", "parallel")),
    )(x, ln1_g, ln1_b, wqkv, bqkv)

    # ---- kernel 2: flash attention + fused out-proj + residual 1 -----------
    # NOTE: m/l scratches pad their last dim to 128 lanes; accepted since TK is
    # already shrunk on small-VMEM parts (review item: merge only if needed).
    y1 = pl.pallas_call(
        functools.partial(
            _flash_attn_kernel, num_heads=num_heads,
            exp_dtype=(jnp.float32 if f32_path else jnp.bfloat16),
            exact_div=f32_path),
        out_shape=jax.ShapeDtypeStruct((B, S, H), jnp.float32),   # f32 trunk
        grid_spec=pltpu.PrefetchScalarGridSpec(
            num_scalar_prefetch=0,
            grid=(B, S // TQ, S // TK),
            in_specs=[
                pl.BlockSpec((pl.Squeezed(), num_heads, TQ, hd),
                             lambda b, qi, ki: (b, 0, qi, 0)),
                pl.BlockSpec((pl.Squeezed(), num_heads, TK, hd),
                             lambda b, qi, ki: (b, 0, ki, 0)),
                pl.BlockSpec((pl.Squeezed(), num_heads, TK, hd),
                             lambda b, qi, ki: (b, 0, ki, 0)),
                pl.BlockSpec((pl.Squeezed(), TQ, H),
                             lambda b, qi, ki: (b, qi, 0)),       # x (residual)
                resident((num_heads, hd, H)),                     # Wo head-major
                resident((1, H)),                                 # bo
            ],
            out_specs=pl.BlockSpec((pl.Squeezed(), TQ, H),
                                   lambda b, qi, ki: (b, qi, 0)),
            scratch_shapes=[
                pltpu.VMEM((num_heads, TQ, 1), jnp.float32),   # running max
                pltpu.VMEM((num_heads, TQ, 1), jnp.float32),   # running sum
                pltpu.VMEM((num_heads, TQ, hd), jnp.float32),  # output acc
            ],
        ),
        compiler_params=cparams(("parallel", "parallel", "arbitrary")),
    )(q, k, v, x, wo_r, bo)

    # ---- kernel 3: LN2 + tiled FFN + residual 2 -----------------------------
    out = pl.pallas_call(
        _ln2_ffn_kernel,
        out_shape=jax.ShapeDtypeStruct((B, S, H), x.dtype),
        grid_spec=pltpu.PrefetchScalarGridSpec(
            num_scalar_prefetch=0,
            grid=(B, S // TQ, F4 // TF),
            in_specs=[
                pl.BlockSpec((pl.Squeezed(), TQ, H), lambda b, i, f: (b, i, 0)),
                resident((1, H)),                                # ln2 gamma
                resident((1, H)),                                # ln2 beta
                pl.BlockSpec((H, TF), lambda b, i, f: (0, f)),   # w1 column tile
                pl.BlockSpec((1, TF), lambda b, i, f: (0, f)),   # b1 tile
                pl.BlockSpec((TF, H), lambda b, i, f: (f, 0)),   # w2 row tile
                resident((1, H)),                                # b2
            ],
            out_specs=pl.BlockSpec((pl.Squeezed(), TQ, H),
                                   lambda b, i, f: (b, i, 0)),
            scratch_shapes=[
                pltpu.VMEM((TQ, H), compute_dtype),   # LN2(y1), staged at f==0
                pltpu.VMEM((TQ, H), jnp.float32),     # FFN accumulator
            ],
        ),
        compiler_params=cparams(("parallel", "parallel", "arbitrary")),
    )(y1, ln2_g, ln2_b, w1, b1, w2, b2)

    return out


# ----------------------------------------------------------------------------
# pure-JAX reference (matches the PyTorch module's math, f32)
# ----------------------------------------------------------------------------
def reference_block(x, params, num_heads):
    (ln1_g, ln1_b, wq, wk, wv, bq, bk, bv, wo, bo,
     ln2_g, ln2_b, w1, b1, w2, b2) = params
    B, S, H = x.shape
    hd = H // num_heads
    scale = 1.0 / (hd ** 0.5)

    xn = _layernorm(x, ln1_g, ln1_b)
    q = xn @ wq + bq
    k = xn @ wk + bk
    v = xn @ wv + bv
    q = q.reshape(B, S, num_heads, hd).transpose(0, 2, 1, 3)
    k = k.reshape(B, S, num_heads, hd).transpose(0, 2, 1, 3)
    v = v.reshape(B, S, num_heads, hd).transpose(0, 2, 1, 3)
    s = jnp.einsum("bhqd,bhkd->bhqk", q, k) * scale
    p = jax.nn.softmax(s, axis=-1)
    a = jnp.einsum("bhqk,bhkd->bhqd", p, v).transpose(0, 2, 1, 3).reshape(B, S, H)
    a = a @ wo + bo
    x = x + a
    xn2 = _layernorm(x, ln2_g, ln2_b)
    h1 = _gelu_exact(xn2 @ w1 + b1)
    h2 = h1 @ w2 + b2
    return x + h2


def make_params(key, H):
    F4 = 4 * H
    ks = jax.random.split(key, 8)
    sc = 1.0 / (H ** 0.5)
    ln1_g = jnp.ones((1, H), jnp.float32)
    ln1_b = jnp.zeros((1, H), jnp.float32)
    ln2_g = jnp.ones((1, H), jnp.float32)
    ln2_b = jnp.zeros((1, H), jnp.float32)
    wq = jax.random.normal(ks[0], (H, H), jnp.float32) * sc
    wk = jax.random.normal(ks[1], (H, H), jnp.float32) * sc
    wv = jax.random.normal(ks[2], (H, H), jnp.float32) * sc
    bq = jax.random.normal(ks[3], (1, H), jnp.float32) * 0.01
    bk = jnp.zeros((1, H), jnp.float32)
    bv = jnp.zeros((1, H), jnp.float32)
    wo = jax.random.normal(ks[4], (H, H), jnp.float32) * sc
    bo = jnp.zeros((1, H), jnp.float32)
    w1 = jax.random.normal(ks[5], (H, F4), jnp.float32) * sc
    b1 = jax.random.normal(ks[6], (1, F4), jnp.float32) * 0.01
    w2 = jax.random.normal(ks[7], (F4, H), jnp.float32) * (1.0 / (F4 ** 0.5))
    b2 = jnp.zeros((1, H), jnp.float32)
    return (ln1_g, ln1_b, wq, wk, wv, bq, bk, bv, wo, bo,
            ln2_g, ln2_b, w1, b1, w2, b2)


if __name__ == "__main__":
    B, S, H, NH = 2, 8, 32, 4
    key = jax.random.PRNGKey(0)
    kx, kp = jax.random.split(key)
    x = jax.random.normal(kx, (B, S, H), jnp.float32)
    params = make_params(kp, H)

    ref = reference_block(x, params, NH)

    # f32 compute path: tight correctness check (exact softmax divide).
    prep_f32 = prepare_params(params, NH, compute_dtype=jnp.float32)
    out_f32 = jax.block_until_ready(transformer_block(x, prep_f32, NH))
    assert out_f32.shape == (B, S, H)
    assert jnp.allclose(out_f32, ref, atol=1e-3, rtol=1e-3), "f32 path mismatch"

    # bf16 compute path (production / MXU-optimized): looser tolerance.
    prep_bf16 = prepare_params(params, NH, compute_dtype=jnp.bfloat16)
    out_bf16 = jax.block_until_ready(transformer_block(x, prep_bf16, NH))
    assert out_bf16.shape == (B, S, H)
    assert jnp.allclose(out_bf16, ref, atol=8e-2, rtol=8e-2), "bf16 path mismatch"

    print("KERNEL_OK")
</pallas_src>

<mosaic_0001>
module attributes {stable_mosaic.version = 11 : i64} {
  func.func @_ln_qkv_kernel(%arg0: i32, %arg1: i32, %arg2: memref<1x8x32xf32, #tpu.memory_space<vmem>>, %arg3: memref<1x32xf32, #tpu.memory_space<vmem>>, %arg4: memref<1x32xf32, #tpu.memory_space<vmem>>, %arg5: memref<32x96xf32, #tpu.memory_space<vmem>>, %arg6: memref<1x96xf32, #tpu.memory_space<vmem>>, %arg7: memref<1x4x8x8xf32, #tpu.memory_space<vmem>>, %arg8: memref<1x4x8x8xf32, #tpu.memory_space<vmem>>, %arg9: memref<1x4x8x8xf32, #tpu.memory_space<vmem>>) attributes {dimension_semantics = [#tpu.dimension_semantics<parallel>, #tpu.dimension_semantics<parallel>], iteration_bounds = array<i64: 2, 1>, scalar_prefetch = 0 : i64, scratch_operands = 0 : i64, tpu.core_type = #tpu.core_type<tc>, window_params = [{transform_indices = @transform_0, window_bounds = array<i64: 1, 8, 32>}, {pipeline_mode = #tpu.pipeline_mode<synchronous>, transform_indices = @transform_1, window_bounds = array<i64: 1, 32>}, {pipeline_mode = #tpu.pipeline_mode<synchronous>, transform_indices = @transform_2, window_bounds = array<i64: 1, 32>}, {pipeline_mode = #tpu.pipeline_mode<synchronous>, transform_indices = @transform_3, window_bounds = array<i64: 32, 96>}, {pipeline_mode = #tpu.pipeline_mode<synchronous>, transform_indices = @transform_4, window_bounds = array<i64: 1, 96>}, {transform_indices = @transform_5, window_bounds = array<i64: 1, 4, 8, 8>}, {transform_indices = @transform_6, window_bounds = array<i64: 1, 4, 8, 8>}, {transform_indices = @transform_7, window_bounds = array<i64: 1, 4, 8, 8>}]} {
    %c0 = arith.constant 0 : index
    %c0_0 = arith.constant 0 : index
    %c0_1 = arith.constant 0 : index
    %0 = vector.load %arg2[%c0, %c0_0, %c0_1] : memref<1x8x32xf32, #tpu.memory_space<vmem>>, vector<1x8x32xf32>
    %1 = vector.shape_cast %0 : vector<1x8x32xf32> to vector<8x32xf32>
    %c0_2 = arith.constant 0 : index
    %c0_3 = arith.constant 0 : index
    %2 = vector.load %arg3[%c0_2, %c0_3] : memref<1x32xf32, #tpu.memory_space<vmem>>, vector<1x32xf32>
    %c0_4 = arith.constant 0 : index
    %c0_5 = arith.constant 0 : index
    %3 = vector.load %arg4[%c0_4, %c0_5] : memref<1x32xf32, #tpu.memory_space<vmem>>, vector<1x32xf32>
    %cst = arith.constant dense<0.000000e+00> : vector<8xf32>
    %4 = vector.multi_reduction <add>, %1, %cst [1] : vector<8x32xf32> to vector<8xf32>
    %5 = vector.shape_cast %4 : vector<8xf32> to vector<8x1xf32>
    %cst_6 = arith.constant 3.200000e+01 : f32
    %6 = vector.broadcast %cst_6 : f32 to vector<8x1xf32>
    %7 = arith.divf %5, %6 : vector<8x1xf32>
    %8 = vector.broadcast %7 : vector<8x1xf32> to vector<8x32xf32>
    %9 = arith.subf %1, %8 : vector<8x32xf32>
    %10 = arith.mulf %9, %9 : vector<8x32xf32>
    %cst_7 = arith.constant dense<0.000000e+00> : vector<8xf32>
    %11 = vector.multi_reduction <add>, %10, %cst_7 [1] : vector<8x32xf32> to vector<8xf32>
    %12 = vector.shape_cast %11 : vector<8xf32> to vector<8x1xf32>
    %cst_8 = arith.constant 3.200000e+01 : f32
    %13 = vector.broadcast %cst_8 : f32 to vector<8x1xf32>
    %14 = arith.divf %12, %13 : vector<8x1xf32>
    %15 = vector.broadcast %7 : vector<8x1xf32> to vector<8x32xf32>
    %16 = arith.subf %1, %15 : vector<8x32xf32>
    %cst_9 = arith.constant 9.99999974E-6 : f32
    %17 = vector.broadcast %cst_9 : f32 to vector<8x1xf32>
    %18 = arith.addf %14, %17 : vector<8x1xf32>
    %19 = math.rsqrt %18 : vector<8x1xf32>
    %20 = vector.broadcast %19 : vector<8x1xf32> to vector<8x32xf32>
    %21 = arith.mulf %16, %20 : vector<8x32xf32>
    %22 = vector.broadcast %2 : vector<1x32xf32> to vector<8x32xf32>
    %23 = arith.mulf %21, %22 : vector<8x32xf32>
    %24 = vector.broadcast %3 : vector<1x32xf32> to vector<8x32xf32>
    %25 = arith.addf %23, %24 : vector<8x32xf32>
    %c0_10 = arith.constant 0 : index
    %c0_11 = arith.constant 0 : index
    %26 = vector.load %arg5[%c0_10, %c0_11] : memref<32x96xf32, #tpu.memory_space<vmem>>, vector<32x96xf32>
    %cst_12 = arith.constant dense<0.000000e+00> : vector<8x96xf32>
    %27 = tpu.matmul %25, %26, %cst_12 {dimension_numbers = #tpu.dot_dimension_numbers<[1], [0], [0], [1], [0, 0, 1, 1], [], []>} : vector<8x32xf32>, vector<32x96xf32>, vector<8x96xf32> -> vector<8x96xf32>
    %c0_13 = arith.constant 0 : index
    %c0_14 = arith.constant 0 : index
    %28 = vector.load %arg6[%c0_13, %c0_14] : memref<1x96xf32, #tpu.memory_space<vmem>>, vector<1x96xf32>
    %29 = vector.broadcast %28 : vector<1x96xf32> to vector<8x96xf32>
    %30 = arith.addf %27, %29 : vector<8x96xf32>
    %31 = vector.extract_strided_slice %30 {offsets = [0, 0], sizes = [8, 8], strides = [1, 1]} : vector<8x96xf32> to vector<8x8xf32>
    %c0_15 = arith.constant 0 : index
    %c0_16 = arith.constant 0 : index
    %c0_17 = arith.constant 0 : index
    %c0_18 = arith.constant 0 : index
    %32 = vector.load %arg7[%c0_15, %c0_16, %c0_17, %c0_18] : memref<1x4x8x8xf32, #tpu.memory_space<vmem>>, vector<1x1x8x8xf32>
    %33 = vector.shape_cast %32 : vector<1x1x8x8xf32> to vector<8x8xf32>
    %34 = vector.shape_cast %31 : vector<8x8xf32> to vector<1x1x8x8xf32>
    tpu.vector_store %arg7[%c0_15, %c0_16, %c0_17, %c0_18], %34 {strides = array<i32>} : memref<1x4x8x8xf32, #tpu.memory_space<vmem>>, vector<1x1x8x8xf32>,
    %35 = vector.extract_strided_slice %30 {offsets = [0, 32], sizes = [8, 8], strides = [1, 1]} : vector<8x96xf32> to vector<8x8xf32>
    %c0_19 = arith.constant 0 : index
    %c0_20 = arith.constant 0 : index
    %c0_21 = arith.constant 0 : index
    %c0_22 = arith.constant 0 : index
    %36 = vector.load %arg8[%c0_19, %c0_20, %c0_21, %c0_22] : memref<1x4x8x8xf32, #tpu.memory_space<vmem>>, vector<1x1x8x8xf32>
    %37 = vector.shape_cast %36 : vector<1x1x8x8xf32> to vector<8x8xf32>
    %38 = vector.shape_cast %35 : vector<8x8xf32> to vector<1x1x8x8xf32>
    tpu.vector_store %arg8[%c0_19, %c0_20, %c0_21, %c0_22], %38 {strides = array<i32>} : memref<1x4x8x8xf32, #tpu.memory_space<vmem>>, vector<1x1x8x8xf32>,
    %39 = vector.extract_strided_slice %30 {offsets = [0, 64], sizes = [8, 8], strides = [1, 1]} : vector<8x96xf32> to vector<8x8xf32>
    %c0_23 = arith.constant 0 : index
    %c0_24 = arith.constant 0 : index
    %c0_25 = arith.constant 0 : index
    %c0_26 = arith.constant 0 : index
    %40 = vector.load %arg9[%c0_23, %c0_24, %c0_25, %c0_26] : memref<1x4x8x8xf32, #tpu.memory_space<vmem>>, vector<1x1x8x8xf32>
    %41 = vector.shape_cast %40 : vector<1x1x8x8xf32> to vector<8x8xf32>
    %42 = vector.shape_cast %39 : vector<8x8xf32> to vector<1x1x8x8xf32>
    tpu.vector_store %arg9[%c0_23, %c0_24, %c0_25, %c0_26], %42 {strides = array<i32>} : memref<1x4x8x8xf32, #tpu.memory_space<vmem>>, vector<1x1x8x8xf32>,
    %43 = vector.extract_strided_slice %30 {offsets = [0, 8], sizes = [8, 8], strides = [1, 1]} : vector<8x96xf32> to vector<8x8xf32>
    %c0_27 = arith.constant 0 : index
    %c1 = arith.constant 1 : index
    %c0_28 = arith.constant 0 : index
    %c0_29 = arith.constant 0 : index
    %44 = vector.load %arg7[%c0_27, %c1, %c0_28, %c0_29] : memref<1x4x8x8xf32, #tpu.memory_space<vmem>>, vector<1x1x8x8xf32>
    %45 = vector.shape_cast %44 : vector<1x1x8x8xf32> to vector<8x8xf32>
    %46 = vector.shape_cast %43 : vector<8x8xf32> to vector<1x1x8x8xf32>
    tpu.vector_store %arg7[%c0_27, %c1, %c0_28, %c0_29], %46 {strides = array<i32>} : memref<1x4x8x8xf32, #tpu.memory_space<vmem>>, vector<1x1x8x8xf32>,
    %47 = vector.extract_strided_slice %30 {offsets = [0, 40], sizes = [8, 8], strides = [1, 1]} : vector<8x96xf32> to vector<8x8xf32>
    %c0_30 = arith.constant 0 : index
    %c1_31 = arith.constant 1 : index
    %c0_32 = arith.constant 0 : index
    %c0_33 = arith.constant 0 : index
    %48 = vector.load %arg8[%c0_30, %c1_31, %c0_32, %c0_33] : memref<1x4x8x8xf32, #tpu.memory_space<vmem>>, vector<1x1x8x8xf32>
    %49 = vector.shape_cast %48 : vector<1x1x8x8xf32> to vector<8x8xf32>
    %50 = vector.shape_cast %47 : vector<8x8xf32> to vector<1x1x8x8xf32>
    tpu.vector_store %arg8[%c0_30, %c1_31, %c0_32, %c0_33], %50 {strides = array<i32>} : memref<1x4x8x8xf32, #tpu.memory_space<vmem>>, vector<1x1x8x8xf32>,
    %51 = vector.extract_strided_slice %30 {offsets = [0, 72], sizes = [8, 8], strides = [1, 1]} : vector<8x96xf32> to vector<8x8xf32>
    %c0_34 = arith.constant 0 : index
    %c1_35 = arith.constant 1 : index
    %c0_36 = arith.constant 0 : index
    %c0_37 = arith.constant 0 : index
    %52 = vector.load %arg9[%c0_34, %c1_35, %c0_36, %c0_37] : memref<1x4x8x8xf32, #tpu.memory_space<vmem>>, vector<1x1x8x8xf32>
    %53 = vector.shape_cast %52 : vector<1x1x8x8xf32> to vector<8x8xf32>
    %54 = vector.shape_cast %51 : vector<8x8xf32> to vector<1x1x8x8xf32>
    tpu.vector_store %arg9[%c0_34, %c1_35, %c0_36, %c0_37], %54 {strides = array<i32>} : memref<1x4x8x8xf32, #tpu.memory_space<vmem>>, vector<1x1x8x8xf32>,
    %55 = vector.extract_strided_slice %30 {offsets = [0, 16], sizes = [8, 8], strides = [1, 1]} : vector<8x96xf32> to vector<8x8xf32>
    %c0_38 = arith.constant 0 : index
    %c2 = arith.constant 2 : index
    %c0_39 = arith.constant 0 : index
    %c0_40 = arith.constant 0 : index
    %56 = vector.load %arg7[%c0_38, %c2, %c0_39, %c0_40] : memref<1x4x8x8xf32, #tpu.memory_space<vmem>>, vector<1x1x8x8xf32>
    %57 = vector.shape_cast %56 : vector<1x1x8x8xf32> to vector<8x8xf32>
    %58 = vector.shape_cast %55 : vector<8x8xf32> to vector<1x1x8x8xf32>
    tpu.vector_store %arg7[%c0_38, %c2, %c0_39, %c0_40], %58 {strides = array<i32>} : memref<1x4x8x8xf32, #tpu.memory_space<vmem>>, vector<1x1x8x8xf32>,
    %59 = vector.extract_strided_slice %30 {offsets = [0, 48], sizes = [8, 8], strides = [1, 1]} : vector<8x96xf32> to vector<8x8xf32>
    %c0_41 = arith.constant 0 : index
    %c2_42 = arith.constant 2 : index
    %c0_43 = arith.constant 0 : index
    %c0_44 = arith.constant 0 : index
    %60 = vector.load %arg8[%c0_41, %c2_42, %c0_43, %c0_44] : memref<1x4x8x8xf32, #tpu.memory_space<vmem>>, vector<1x1x8x8xf32>
    %61 = vector.shape_cast %60 : vector<1x1x8x8xf32> to vector<8x8xf32>
    %62 = vector.shape_cast %59 : vector<8x8xf32> to vector<1x1x8x8xf32>
    tpu.vector_store %arg8[%c0_41, %c2_42, %c0_43, %c0_44], %62 {strides = array<i32>} : memref<1x4x8x8xf32, #tpu.memory_space<vmem>>, vector<1x1x8x8xf32>,
    %63 = vector.extract_strided_slice %30 {offsets = [0, 80], sizes = [8, 8], strides = [1, 1]} : vector<8x96xf32> to vector<8x8xf32>
    %c0_45 = arith.constant 0 : index
    %c2_46 = arith.constant 2 : index
    %c0_47 = arith.constant 0 : index
    %c0_48 = arith.constant 0 : index
    %64 = vector.load %arg9[%c0_45, %c2_46, %c0_47, %c0_48] : memref<1x4x8x8xf32, #tpu.memory_space<vmem>>, vector<1x1x8x8xf32>
    %65 = vector.shape_cast %64 : vector<1x1x8x8xf32> to vector<8x8xf32>
    %66 = vector.shape_cast %63 : vector<8x8xf32> to vector<1x1x8x8xf32>
    tpu.vector_store %arg9[%c0_45, %c2_46, %c0_47, %c0_48], %66 {strides = array<i32>} : memref<1x4x8x8xf32, #tpu.memory_space<vmem>>, vector<1x1x8x8xf32>,
    %67 = vector.extract_strided_slice %30 {offsets = [0, 24], sizes = [8, 8], strides = [1, 1]} : vector<8x96xf32> to vector<8x8xf32>
    %c0_49 = arith.constant 0 : index
    %c3 = arith.constant 3 : index
    %c0_50 = arith.constant 0 : index
    %c0_51 = arith.constant 0 : index
    %68 = vector.load %arg7[%c0_49, %c3, %c0_50, %c0_51] : memref<1x4x8x8xf32, #tpu.memory_space<vmem>>, vector<1x1x8x8xf32>
    %69 = vector.shape_cast %68 : vector<1x1x8x8xf32> to vector<8x8xf32>
    %70 = vector.shape_cast %67 : vector<8x8xf32> to vector<1x1x8x8xf32>
    tpu.vector_store %arg7[%c0_49, %c3, %c0_50, %c0_51], %70 {strides = array<i32>} : memref<1x4x8x8xf32, #tpu.memory_space<vmem>>, vector<1x1x8x8xf32>,
    %71 = vector.extract_strided_slice %30 {offsets = [0, 56], sizes = [8, 8], strides = [1, 1]} : vector<8x96xf32> to vector<8x8xf32>
    %c0_52 = arith.constant 0 : index
    %c3_53 = arith.constant 3 : index
    %c0_54 = arith.constant 0 : index
    %c0_55 = arith.constant 0 : index
    %72 = vector.load %arg8[%c0_52, %c3_53, %c0_54, %c0_55] : memref<1x4x8x8xf32, #tpu.memory_space<vmem>>, vector<1x1x8x8xf32>
    %73 = vector.shape_cast %72 : vector<1x1x8x8xf32> to vector<8x8xf32>
    %74 = vector.shape_cast %71 : vector<8x8xf32> to vector<1x1x8x8xf32>
    tpu.vector_store %arg8[%c0_52, %c3_53, %c0_54, %c0_55], %74 {strides = array<i32>} : memref<1x4x8x8xf32, #tpu.memory_space<vmem>>, vector<1x1x8x8xf32>,
    %75 = vector.extract_strided_slice %30 {offsets = [0, 88], sizes = [8, 8], strides = [1, 1]} : vector<8x96xf32> to vector<8x8xf32>
    %c0_56 = arith.constant 0 : index
    %c3_57 = arith.constant 3 : index
    %c0_58 = arith.constant 0 : index
    %c0_59 = arith.constant 0 : index
    %76 = vector.load %arg9[%c0_56, %c3_57, %c0_58, %c0_59] : memref<1x4x8x8xf32, #tpu.memory_space<vmem>>, vector<1x1x8x8xf32>
    %77 = vector.shape_cast %76 : vector<1x1x8x8xf32> to vector<8x8xf32>
    %78 = vector.shape_cast %75 : vector<8x8xf32> to vector<1x1x8x8xf32>
    tpu.vector_store %arg9[%c0_56, %c3_57, %c0_58, %c0_59], %78 {strides = array<i32>} : memref<1x4x8x8xf32, #tpu.memory_space<vmem>>, vector<1x1x8x8xf32>,
    return
  }
  func.func @transform_0(%arg0: i32, %arg1: i32) -> (i32, i32, i32) {
    %c0_i32 = arith.constant 0 : i32
    %c0_i32_0 = arith.constant 0 : i32
    return %arg0, %arg1, %c0_i32 : i32, i32, i32
  }
  func.func @transform_1(%arg0: i32, %arg1: i32) -> (i32, i32) {
    %c0_i32 = arith.constant 0 : i32
    %c0_i32_0 = arith.constant 0 : i32
    %c0_i32_1 = arith.constant 0 : i32
    return %c0_i32, %c0_i32_0 : i32, i32
  }
  func.func @transform_2(%arg0: i32, %arg1: i32) -> (i32, i32) {
    %c0_i32 = arith.constant 0 : i32
    %c0_i32_0 = arith.constant 0 : i32
    %c0_i32_1 = arith.constant 0 : i32
    return %c0_i32, %c0_i32_0 : i32, i32
  }
  func.func @transform_3(%arg0: i32, %arg1: i32) -> (i32, i32) {
    %c0_i32 = arith.constant 0 : i32
    %c0_i32_0 = arith.constant 0 : i32
    %c0_i32_1 = arith.constant 0 : i32
    return %c0_i32, %c0_i32_0 : i32, i32
  }
  func.func @transform_4(%arg0: i32, %arg1: i32) -> (i32, i32) {
    %c0_i32 = arith.constant 0 : i32
    %c0_i32_0 = arith.constant 0 : i32
    %c0_i32_1 = arith.constant 0 : i32
    return %c0_i32, %c0_i32_0 : i32, i32
  }
  func.func @transform_5(%arg0: i32, %arg1: i32) -> (i32, i32, i32, i32) {
    %c0_i32 = arith.constant 0 : i32
    %c0_i32_0 = arith.constant 0 : i32
    %c0_i32_1 = arith.constant 0 : i32
    return %arg0, %c0_i32, %arg1, %c0_i32_0 : i32, i32, i32, i32
  }
  func.func @transform_6(%arg0: i32, %arg1: i32) -> (i32, i32, i32, i32) {
    %c0_i32 = arith.constant 0 : i32
    %c0_i32_0 = arith.constant 0 : i32
    %c0_i32_1 = arith.constant 0 : i32
    return %arg0, %c0_i32, %arg1, %c0_i32_0 : i32, i32, i32, i32
  }
  func.func @transform_7(%arg0: i32, %arg1: i32) -> (i32, i32, i32, i32) {
    %c0_i32 = arith.constant 0 : i32
    %c0_i32_0 = arith.constant 0 : i32
    %c0_i32_1 = arith.constant 0 : i32
    return %arg0, %c0_i32, %arg1, %c0_i32_0 : i32, i32, i32, i32
  }
}

module attributes {stable_mosaic.version = 11 : i64} {
  func.func @_ln2_ffn_kernel(%arg0: i32, %arg1: i32, %arg2: i32, %arg3: memref<1x8x32xf32, #tpu.memory_space<vmem>>, %arg4: memref<1x32xf32, #tpu.memory_space<vmem>>, %arg5: memref<1x32xf32, #tpu.memory_space<vmem>>, %arg6: memref<32x128xf32, #tpu.memory_space<vmem>>, %arg7: memref<1x128xf32, #tpu.memory_space<vmem>>, %arg8: memref<128x32xf32, #tpu.memory_space<vmem>>, %arg9: memref<1x32xf32, #tpu.memory_space<vmem>>, %arg10: memref<1x8x32xf32, #tpu.memory_space<vmem>>, %arg11: memref<8x32xf32, #tpu.memory_space<vmem>>, %arg12: memref<8x32xf32, #tpu.memory_space<vmem>>) attributes {dimension_semantics = [#tpu.dimension_semantics<parallel>, #tpu.dimension_semantics<parallel>, #tpu.dimension_semantics<arbitrary>], iteration_bounds = array<i64: 2, 1, 1>, scalar_prefetch = 0 : i64, scratch_operands = 2 : i64, tpu.core_type = #tpu.core_type<tc>, window_params = [{transform_indices = @transform_0, window_bounds = array<i64: 1, 8, 32>}, {pipeline_mode = #tpu.pipeline_mode<synchronous>, transform_indices = @transform_1, window_bounds = array<i64: 1, 32>}, {pipeline_mode = #tpu.pipeline_mode<synchronous>, transform_indices = @transform_2, window_bounds = array<i64: 1, 32>}, {transform_indices = @transform_3, window_bounds = array<i64: 32, 128>}, {transform_indices = @transform_4, window_bounds = array<i64: 1, 128>}, {transform_indices = @transform_5, window_bounds = array<i64: 128, 32>}, {pipeline_mode = #tpu.pipeline_mode<synchronous>, transform_indices = @transform_6, window_bounds = array<i64: 1, 32>}, {transform_indices = @transform_7, window_bounds = array<i64: 1, 8, 32>}]} {
    %c0_i32 = arith.constant 0 : i32
    %0 = arith.cmpi eq, %arg2, %c0_i32 : i32
    %1 = arith.extui %0 : i1 to i32
    %c0_i32_0 = arith.constant 0 : i32
    %2 = arith.cmpi ne, %1, %c0_i32_0 : i32
    scf.if %2 {
      %c0_18 = arith.constant 0 : index
      %c0_19 = arith.constant 0 : index
      %c0_20 = arith.constant 0 : index
      %25 = vector.load %arg3[%c0_18, %c0_19, %c0_20] : memref<1x8x32xf32, #tpu.memory_space<vmem>>, vector<1x8x32xf32>
      %26 = vector.shape_cast %25 : vector<1x8x32xf32> to vector<8x32xf32>
      %c0_21 = arith.constant 0 : index
      %c0_22 = arith.constant 0 : index
      %27 = vector.load %arg4[%c0_21, %c0_22] : memref<1x32xf32, #tpu.memory_space<vmem>>, vector<1x32xf32>
      %c0_23 = arith.constant 0 : index
      %c0_24 = arith.constant 0 : index
      %28 = vector.load %arg5[%c0_23, %c0_24] : memref<1x32xf32, #tpu.memory_space<vmem>>, vector<1x32xf32>
      %cst_25 = arith.constant dense<0.000000e+00> : vector<8xf32>
      %29 = vector.multi_reduction <add>, %26, %cst_25 [1] : vector<8x32xf32> to vector<8xf32>
      %30 = vector.shape_cast %29 : vector<8xf32> to vector<8x1xf32>
      %cst_26 = arith.constant 3.200000e+01 : f32
      %31 = vector.broadcast %cst_26 : f32 to vector<8x1xf32>
      %32 = arith.divf %30, %31 : vector<8x1xf32>
      %33 = vector.broadcast %32 : vector<8x1xf32> to vector<8x32xf32>
      %34 = arith.subf %26, %33 : vector<8x32xf32>
      %35 = arith.mulf %34, %34 : vector<8x32xf32>
      %cst_27 = arith.constant dense<0.000000e+00> : vector<8xf32>
      %36 = vector.multi_reduction <add>, %35, %cst_27 [1] : vector<8x32xf32> to vector<8xf32>
      %37 = vector.shape_cast %36 : vector<8xf32> to vector<8x1xf32>
      %cst_28 = arith.constant 3.200000e+01 : f32
      %38 = vector.broadcast %cst_28 : f32 to vector<8x1xf32>
      %39 = arith.divf %37, %38 : vector<8x1xf32>
      %40 = vector.broadcast %32 : vector<8x1xf32> to vector<8x32xf32>
      %41 = arith.subf %26, %40 : vector<8x32xf32>
      %cst_29 = arith.constant 9.99999974E-6 : f32
      %42 = vector.broadcast %cst_29 : f32 to vector<8x1xf32>
      %43 = arith.addf %39, %42 : vector<8x1xf32>
      %44 = math.rsqrt %43 : vector<8x1xf32>
      %45 = vector.broadcast %44 : vector<8x1xf32> to vector<8x32xf32>
      %46 = arith.mulf %41, %45 : vector<8x32xf32>
      %47 = vector.broadcast %27 : vector<1x32xf32> to vector<8x32xf32>
      %48 = arith.mulf %46, %47 : vector<8x32xf32>
      %49 = vector.broadcast %28 : vector<1x32xf32> to vector<8x32xf32>
      %50 = arith.addf %48, %49 : vector<8x32xf32>
      %c0_30 = arith.constant 0 : index
      %c0_31 = arith.constant 0 : index
      %51 = vector.load %arg11[%c0_30, %c0_31] : memref<8x32xf32, #tpu.memory_space<vmem>>, vector<8x32xf32>
      tpu.vector_store %arg11[%c0_30, %c0_31], %50 {strides = array<i32>} : memref<8x32xf32, #tpu.memory_space<vmem>>, vector<8x32xf32>,
      %cst_32 = arith.constant 0.000000e+00 : f32
      %52 = vector.broadcast %cst_32 : f32 to vector<8x32xf32>
      %c0_33 = arith.constant 0 : index
      %c0_34 = arith.constant 0 : index
      %53 = vector.load %arg12[%c0_33, %c0_34] : memref<8x32xf32, #tpu.memory_space<vmem>>, vector<8x32xf32>
      tpu.vector_store %arg12[%c0_33, %c0_34], %52 {strides = array<i32>} : memref<8x32xf32, #tpu.memory_space<vmem>>, vector<8x32xf32>,
    } else {
    }
    %c0 = arith.constant 0 : index
    %c0_1 = arith.constant 0 : index
    %3 = vector.load %arg11[%c0, %c0_1] : memref<8x32xf32, #tpu.memory_space<vmem>>, vector<8x32xf32>
    %c0_2 = arith.constant 0 : index
    %c0_3 = arith.constant 0 : index
    %4 = vector.load %arg6[%c0_2, %c0_3] : memref<32x128xf32, #tpu.memory_space<vmem>>, vector<32x128xf32>
    %cst = arith.constant dense<0.000000e+00> : vector<8x128xf32>
    %5 = tpu.matmul %3, %4, %cst {dimension_numbers = #tpu.dot_dimension_numbers<[1], [0], [0], [1], [0, 0, 1, 1], [], []>} : vector<8x32xf32>, vector<32x128xf32>, vector<8x128xf32> -> vector<8x128xf32>
    %c0_4 = arith.constant 0 : index
    %c0_5 = arith.constant 0 : index
    %6 = vector.load %arg7[%c0_4, %c0_5] : memref<1x128xf32, #tpu.memory_space<vmem>>, vector<1x128xf32>
    %7 = vector.broadcast %6 : vector<1x128xf32> to vector<8x128xf32>
    %8 = arith.addf %5, %7 : vector<8x128xf32>
    %cst_6 = arith.constant 5.000000e-01 : f32
    %9 = vector.broadcast %cst_6 : f32 to vector<8x128xf32>
    %10 = arith.mulf %9, %8 : vector<8x128xf32>
    %cst_7 = arith.constant 0.707106769 : f32
    %11 = vector.broadcast %cst_7 : f32 to vector<8x128xf32>
    %12 = arith.mulf %8, %11 : vector<8x128xf32>
    %13 = math.erf %12 : vector<8x128xf32>
    %cst_8 = arith.constant 1.000000e+00 : f32
    %14 = vector.broadcast %cst_8 : f32 to vector<8x128xf32>
    %15 = arith.addf %14, %13 : vector<8x128xf32>
    %16 = arith.mulf %10, %15 : vector<8x128xf32>
    %c0_9 = arith.constant 0 : index
    %c0_10 = arith.constant 0 : index
    %17 = vector.load %arg12[%c0_9, %c0_10] : memref<8x32xf32, #tpu.memory_space<vmem>>, vector<8x32xf32>
    %c0_11 = arith.constant 0 : index
    %c0_12 = arith.constant 0 : index
    %18 = vector.load %arg8[%c0_11, %c0_12] : memref<128x32xf32, #tpu.memory_space<vmem>>, vector<128x32xf32>
    %cst_13 = arith.constant dense<0.000000e+00> : vector<8x32xf32>
    %19 = tpu.matmul %16, %18, %cst_13 {dimension_numbers = #tpu.dot_dimension_numbers<[1], [0], [0], [1], [0, 0, 1, 1], [], []>} : vector<8x128xf32>, vector<128x32xf32>, vector<8x32xf32> -> vector<8x32xf32>
    %20 = arith.addf %17, %19 : vector<8x32xf32>
    %c0_14 = arith.constant 0 : index
    %c0_15 = arith.constant 0 : index
    %21 = vector.load %arg12[%c0_14, %c0_15] : memref<8x32xf32, #tpu.memory_space<vmem>>, vector<8x32xf32>
    tpu.vector_store %arg12[%c0_14, %c0_15], %20 {strides = array<i32>} : memref<8x32xf32, #tpu.memory_space<vmem>>, vector<8x32xf32>,
    %c0_i32_16 = arith.constant 0 : i32
    %22 = arith.cmpi eq, %arg2, %c0_i32_16 : i32
    %23 = arith.extui %22 : i1 to i32
    %c0_i32_17 = arith.constant 0 : i32
    %24 = arith.cmpi ne, %23, %c0_i32_17 : i32
    scf.if %24 {
      %c0_18 = arith.constant 0 : index
      %c0_19 = arith.constant 0 : index
      %c0_20 = arith.constant 0 : index
      %25 = vector.load %arg3[%c0_18, %c0_19, %c0_20] : memref<1x8x32xf32, #tpu.memory_space<vmem>>, vector<1x8x32xf32>
      %26 = vector.shape_cast %25 : vector<1x8x32xf32> to vector<8x32xf32>
      %c0_21 = arith.constant 0 : index
      %c0_22 = arith.constant 0 : index
      %27 = vector.load %arg12[%c0_21, %c0_22] : memref<8x32xf32, #tpu.memory_space<vmem>>, vector<8x32xf32>
      %28 = arith.addf %26, %27 : vector<8x32xf32>
      %c0_23 = arith.constant 0 : index
      %c0_24 = arith.constant 0 : index
      %29 = vector.load %arg9[%c0_23, %c0_24] : memref<1x32xf32, #tpu.memory_space<vmem>>, vector<1x32xf32>
      %30 = vector.broadcast %29 : vector<1x32xf32> to vector<8x32xf32>
      %31 = arith.addf %28, %30 : vector<8x32xf32>
      %c0_25 = arith.constant 0 : index
      %c0_26 = arith.constant 0 : index
      %c0_27 = arith.constant 0 : index
      %32 = vector.load %arg10[%c0_25, %c0_26, %c0_27] : memref<1x8x32xf32, #tpu.memory_space<vmem>>, vector<1x8x32xf32>
      %33 = vector.shape_cast %32 : vector<1x8x32xf32> to vector<8x32xf32>
      %34 = vector.shape_cast %31 : vector<8x32xf32> to vector<1x8x32xf32>
      tpu.vector_store %arg10[%c0_25, %c0_26, %c0_27], %34 {strides = array<i32>} : memref<1x8x32xf32, #tpu.memory_space<vmem>>, vector<1x8x32xf32>,
    } else {
    }
    return
  }
  func.func @transform_0(%arg0: i32, %arg1: i32, %arg2: i32) -> (i32, i32, i32) {
    %c0_i32 = arith.constant 0 : i32
    %c0_i32_0 = arith.constant 0 : i32
    return %arg0, %arg1, %c0_i32 : i32, i32, i32
  }
  func.func @transform_1(%arg0: i32, %arg1: i32, %arg2: i32) -> (i32, i32) {
    %c0_i32 = arith.constant 0 : i32
    %c0_i32_0 = arith.constant 0 : i32
    %c0_i32_1 = arith.constant 0 : i32
    return %c0_i32, %c0_i32_0 : i32, i32
  }
  func.func @transform_2(%arg0: i32, %arg1: i32, %arg2: i32) -> (i32, i32) {
    %c0_i32 = arith.constant 0 : i32
    %c0_i32_0 = arith.constant 0 : i32
    %c0_i32_1 = arith.constant 0 : i32
    return %c0_i32, %c0_i32_0 : i32, i32
  }
  func.func @transform_3(%arg0: i32, %arg1: i32, %arg2: i32) -> (i32, i32) {
    %c0_i32 = arith.constant 0 : i32
    %c0_i32_0 = arith.constant 0 : i32
    return %c0_i32, %arg2 : i32, i32
  }
  func.func @transform_4(%arg0: i32, %arg1: i32, %arg2: i32) -> (i32, i32) {
    %c0_i32 = arith.constant 0 : i32
    %c0_i32_0 = arith.constant 0 : i32
    return %c0_i32, %arg2 : i32, i32
  }
  func.func @transform_5(%arg0: i32, %arg1: i32, %arg2: i32) -> (i32, i32) {
    %c0_i32 = arith.constant 0 : i32
    %c0_i32_0 = arith.constant 0 : i32
    return %arg2, %c0_i32 : i32, i32
  }
  func.func @transform_6(%arg0: i32, %arg1: i32, %arg2: i32) -> (i32, i32) {
    %c0_i32 = arith.constant 0 : i32
    %c0_i32_0 = arith.constant 0 : i32
    %c0_i32_1 = arith.constant 0 : i32
    return %c0_i32, %c0_i32_0 : i32, i32
  }
  func.func @transform_7(%arg0: i32, %arg1: i32, %arg2: i32) -> (i32, i32, i32) {
    %c0_i32 = arith.constant 0 : i32
    %c0_i32_0 = arith.constant 0 : i32
    return %arg0, %arg1, %c0_i32 : i32, i32, i32
  }
}

module attributes {stable_mosaic.version = 11 : i64} {
  func.func @_flash_attn_kernel(%arg0: i32, %arg1: i32, %arg2: i32, %arg3: memref<1x4x8x8xf32, #tpu.memory_space<vmem>>, %arg4: memref<1x4x8x8xf32, #tpu.memory_space<vmem>>, %arg5: memref<1x4x8x8xf32, #tpu.memory_space<vmem>>, %arg6: memref<1x8x32xf32, #tpu.memory_space<vmem>>, %arg7: memref<4x8x32xf32, #tpu.memory_space<vmem>>, %arg8: memref<1x32xf32, #tpu.memory_space<vmem>>, %arg9: memref<1x8x32xf32, #tpu.memory_space<vmem>>, %arg10: memref<4x8x1xf32, #tpu.memory_space<vmem>>, %arg11: memref<4x8x1xf32, #tpu.memory_space<vmem>>, %arg12: memref<4x8x8xf32, #tpu.memory_space<vmem>>) attributes {dimension_semantics = [#tpu.dimension_semantics<parallel>, #tpu.dimension_semantics<parallel>, #tpu.dimension_semantics<arbitrary>], iteration_bounds = array<i64: 2, 1, 1>, scalar_prefetch = 0 : i64, scratch_operands = 3 : i64, tpu.core_type = #tpu.core_type<tc>, window_params = [{transform_indices = @transform_0, window_bounds = array<i64: 1, 4, 8, 8>}, {transform_indices = @transform_1, window_bounds = array<i64: 1, 4, 8, 8>}, {transform_indices = @transform_2, window_bounds = array<i64: 1, 4, 8, 8>}, {transform_indices = @transform_3, window_bounds = array<i64: 1, 8, 32>}, {pipeline_mode = #tpu.pipeline_mode<synchronous>, transform_indices = @transform_4, window_bounds = array<i64: 4, 8, 32>}, {pipeline_mode = #tpu.pipeline_mode<synchronous>, transform_indices = @transform_5, window_bounds = array<i64: 1, 32>}, {transform_indices = @transform_6, window_bounds = array<i64: 1, 8, 32>}]} {
    %c0_i32 = arith.constant 0 : i32
    %0 = arith.cmpi eq, %arg2, %c0_i32 : i32
    %1 = arith.extui %0 : i1 to i32
    %c0_i32_0 = arith.constant 0 : i32
    %2 = arith.cmpi ne, %1, %c0_i32_0 : i32
    scf.if %2 {
      %cst_35 = arith.constant 0xFF800000 : f32
      %35 = vector.broadcast %cst_35 : f32 to vector<4x8x1xf32>
      %c0_36 = arith.constant 0 : index
      %c0_37 = arith.constant 0 : index
      %c0_38 = arith.constant 0 : index
      %36 = vector.load %arg10[%c0_36, %c0_37, %c0_38] : memref<4x8x1xf32, #tpu.memory_space<vmem>>, vector<4x8x1xf32>
      tpu.vector_store %arg10[%c0_36, %c0_37, %c0_38], %35 {strides = array<i32>} : memref<4x8x1xf32, #tpu.memory_space<vmem>>, vector<4x8x1xf32>,
      %cst_39 = arith.constant 0.000000e+00 : f32
      %37 = vector.broadcast %cst_39 : f32 to vector<4x8x1xf32>
      %c0_40 = arith.constant 0 : index
      %c0_41 = arith.constant 0 : index
      %c0_42 = arith.constant 0 : index
      %38 = vector.load %arg11[%c0_40, %c0_41, %c0_42] : memref<4x8x1xf32, #tpu.memory_space<vmem>>, vector<4x8x1xf32>
      tpu.vector_store %arg11[%c0_40, %c0_41, %c0_42], %37 {strides = array<i32>} : memref<4x8x1xf32, #tpu.memory_space<vmem>>, vector<4x8x1xf32>,
      %cst_43 = arith.constant 0.000000e+00 : f32
      %39 = vector.broadcast %cst_43 : f32 to vector<4x8x8xf32>
      %c0_44 = arith.constant 0 : index
      %c0_45 = arith.constant 0 : index
      %c0_46 = arith.constant 0 : index
      %40 = vector.load %arg12[%c0_44, %c0_45, %c0_46] : memref<4x8x8xf32, #tpu.memory_space<vmem>>, vector<4x8x8xf32>
      tpu.vector_store %arg12[%c0_44, %c0_45, %c0_46], %39 {strides = array<i32>} : memref<4x8x8xf32, #tpu.memory_space<vmem>>, vector<4x8x8xf32>,
    } else {
    }
    %c0 = arith.constant 0 : index
    %c0_1 = arith.constant 0 : index
    %c0_2 = arith.constant 0 : index
    %c0_3 = arith.constant 0 : index
    %3 = vector.load %arg3[%c0, %c0_1, %c0_2, %c0_3] : memref<1x4x8x8xf32, #tpu.memory_space<vmem>>, vector<1x4x8x8xf32>
    %4 = vector.shape_cast %3 : vector<1x4x8x8xf32> to vector<4x8x8xf32>
    %c0_4 = arith.constant 0 : index
    %c0_5 = arith.constant 0 : index
    %c0_6 = arith.constant 0 : index
    %c0_7 = arith.constant 0 : index
    %5 = vector.load %arg4[%c0_4, %c0_5, %c0_6, %c0_7] : memref<1x4x8x8xf32, #tpu.memory_space<vmem>>, vector<1x4x8x8xf32>
    %6 = vector.shape_cast %5 : vector<1x4x8x8xf32> to vector<4x8x8xf32>
    "tpu.trace_start"() <{level = 10 : i32, message = "hqd,hkd->hqk"}> : () -> ()
    %cst = arith.constant dense<0.000000e+00> : vector<4x8x8xf32>
    %7 = tpu.matmul %4, %6, %cst {dimension_numbers = #tpu.dot_dimension_numbers<[2], [2], [1], [1], [0, 0, 0, 1, 1, 1], [0], [0]>} : vector<4x8x8xf32>, vector<4x8x8xf32>, vector<4x8x8xf32> -> vector<4x8x8xf32>
    "tpu.trace_stop"() : () -> ()
    %c0_8 = arith.constant 0 : index
    %c0_9 = arith.constant 0 : index
    %c0_10 = arith.constant 0 : index
    %8 = vector.load %arg10[%c0_8, %c0_9, %c0_10] : memref<4x8x1xf32, #tpu.memory_space<vmem>>, vector<4x8x1xf32>
    %cst_11 = arith.constant dense<0xFF800000> : vector<4x8xf32>
    %9 = vector.multi_reduction <maximumf>, %7, %cst_11 [2] : vector<4x8x8xf32> to vector<4x8xf32>
    %10 = vector.shape_cast %9 : vector<4x8xf32> to vector<4x8x1xf32>
    %11 = arith.maximumf %8, %10 : vector<4x8x1xf32>
    %12 = arith.subf %8, %11 : vector<4x8x1xf32>
    %13 = math.exp %12 : vector<4x8x1xf32>
    %14 = vector.broadcast %11 : vector<4x8x1xf32> to vector<4x8x8xf32>
    %15 = arith.subf %7, %14 : vector<4x8x8xf32>
    %16 = math.exp %15 : vector<4x8x8xf32>
    %c0_12 = arith.constant 0 : index
    %c0_13 = arith.constant 0 : index
    %c0_14 = arith.constant 0 : index
    %17 = vector.load %arg11[%c0_12, %c0_13, %c0_14] : memref<4x8x1xf32, #tpu.memory_space<vmem>>, vector<4x8x1xf32>
    %18 = arith.mulf %13, %17 : vector<4x8x1xf32>
    %cst_15 = arith.constant dense<0.000000e+00> : vector<4x8xf32>
    %19 = vector.multi_reduction <add>, %16, %cst_15 [2] : vector<4x8x8xf32> to vector<4x8xf32>
    %20 = vector.shape_cast %19 : vector<4x8xf32> to vector<4x8x1xf32>
    %21 = arith.addf %18, %20 : vector<4x8x1xf32>
    %c0_16 = arith.constant 0 : index
    %c0_17 = arith.constant 0 : index
    %c0_18 = arith.constant 0 : index
    %22 = vector.load %arg11[%c0_16, %c0_17, %c0_18] : memref<4x8x1xf32, #tpu.memory_space<vmem>>, vector<4x8x1xf32>
    tpu.vector_store %arg11[%c0_16, %c0_17, %c0_18], %21 {strides = array<i32>} : memref<4x8x1xf32, #tpu.memory_space<vmem>>, vector<4x8x1xf32>,
    %c0_19 = arith.constant 0 : index
    %c0_20 = arith.constant 0 : index
    %c0_21 = arith.constant 0 : index
    %23 = vector.load %arg12[%c0_19, %c0_20, %c0_21] : memref<4x8x8xf32, #tpu.memory_space<vmem>>, vector<4x8x8xf32>
    %24 = vector.broadcast %13 : vector<4x8x1xf32> to vector<4x8x8xf32>
    %25 = arith.mulf %24, %23 : vector<4x8x8xf32>
    %c0_22 = arith.constant 0 : index
    %c0_23 = arith.constant 0 : index
    %c0_24 = arith.constant 0 : index
    %c0_25 = arith.constant 0 : index
    %26 = vector.load %arg5[%c0_22, %c0_23, %c0_24, %c0_25] : memref<1x4x8x8xf32, #tpu.memory_space<vmem>>, vector<1x4x8x8xf32>
    %27 = vector.shape_cast %26 : vector<1x4x8x8xf32> to vector<4x8x8xf32>
    "tpu.trace_start"() <{level = 10 : i32, message = "hqk,hkd->hqd"}> : () -> ()
    %cst_26 = arith.constant dense<0.000000e+00> : vector<4x8x8xf32>
    %28 = tpu.matmul %16, %27, %cst_26 {dimension_numbers = #tpu.dot_dimension_numbers<[2], [1], [1], [2], [0, 0, 0, 1, 1, 2], [0], [0]>} : vector<4x8x8xf32>, vector<4x8x8xf32>, vector<4x8x8xf32> -> vector<4x8x8xf32>
    "tpu.trace_stop"() : () -> ()
    %29 = arith.addf %25, %28 : vector<4x8x8xf32>
    %c0_27 = arith.constant 0 : index
    %c0_28 = arith.constant 0 : index
    %c0_29 = arith.constant 0 : index
    %30 = vector.load %arg12[%c0_27, %c0_28, %c0_29] : memref<4x8x8xf32, #tpu.memory_space<vmem>>, vector<4x8x8xf32>
    tpu.vector_store %arg12[%c0_27, %c0_28, %c0_29], %29 {strides = array<i32>} : memref<4x8x8xf32, #tpu.memory_space<vmem>>, vector<4x8x8xf32>,
    %c0_30 = arith.constant 0 : index
    %c0_31 = arith.constant 0 : index
    %c0_32 = arith.constant 0 : index
    %31 = vector.load %arg10[%c0_30, %c0_31, %c0_32] : memref<4x8x1xf32, #tpu.memory_space<vmem>>, vector<4x8x1xf32>
    tpu.vector_store %arg10[%c0_30, %c0_31, %c0_32], %11 {strides = array<i32>} : memref<4x8x1xf32, #tpu.memory_space<vmem>>, vector<4x8x1xf32>,
    %c0_i32_33 = arith.constant 0 : i32
    %32 = arith.cmpi eq, %arg2, %c0_i32_33 : i32
    %33 = arith.extui %32 : i1 to i32
    %c0_i32_34 = arith.constant 0 : i32
    %34 = arith.cmpi ne, %33, %c0_i32_34 : i32
    scf.if %34 {
      %c0_35 = arith.constant 0 : index
      %c0_36 = arith.constant 0 : index
      %c0_37 = arith.constant 0 : index
      %35 = vector.load %arg11[%c0_35, %c0_36, %c0_37] : memref<4x8x1xf32, #tpu.memory_space<vmem>>, vector<4x8x1xf32>
      %c0_38 = arith.constant 0 : index
      %c0_39 = arith.constant 0 : index
      %c0_40 = arith.constant 0 : index
      %36 = vector.load %arg12[%c0_38, %c0_39, %c0_40] : memref<4x8x8xf32, #tpu.memory_space<vmem>>, vector<4x8x8xf32>
      %37 = vector.broadcast %35 : vector<4x8x1xf32> to vector<4x8x8xf32>
      %38 = arith.divf %36, %37 : vector<4x8x8xf32>
      %39 = vector.extract_strided_slice %38 {offsets = [0, 0, 0], sizes = [1, 8, 8], strides = [1, 1, 1]} : vector<4x8x8xf32> to vector<1x8x8xf32>
      %40 = vector.shape_cast %39 : vector<1x8x8xf32> to vector<8x8xf32>
      %c0_41 = arith.constant 0 : index
      %c0_42 = arith.constant 0 : index
      %c0_43 = arith.constant 0 : index
      %41 = vector.load %arg7[%c0_41, %c0_42, %c0_43] : memref<4x8x32xf32, #tpu.memory_space<vmem>>, vector<1x8x32xf32>
      %42 = vector.shape_cast %41 : vector<1x8x32xf32> to vector<8x32xf32>
      %cst_44 = arith.constant dense<0.000000e+00> : vector<8x32xf32>
      %43 = tpu.matmul %40, %42, %cst_44 {dimension_numbers = #tpu.dot_dimension_numbers<[1], [0], [0], [1], [0, 0, 1, 1], [], []>} : vector<8x8xf32>, vector<8x32xf32>, vector<8x32xf32> -> vector<8x32xf32>
      %44 = vector.extract_strided_slice %38 {offsets = [1, 0, 0], sizes = [1, 8, 8], strides = [1, 1, 1]} : vector<4x8x8xf32> to vector<1x8x8xf32>
      %45 = vector.shape_cast %44 : vector<1x8x8xf32> to vector<8x8xf32>
      %c1 = arith.constant 1 : index
      %c0_45 = arith.constant 0 : index
      %c0_46 = arith.constant 0 : index
      %46 = vector.load %arg7[%c1, %c0_45, %c0_46] : memref<4x8x32xf32, #tpu.memory_space<vmem>>, vector<1x8x32xf32>
      %47 = vector.shape_cast %46 : vector<1x8x32xf32> to vector<8x32xf32>
      %cst_47 = arith.constant dense<0.000000e+00> : vector<8x32xf32>
      %48 = tpu.matmul %45, %47, %cst_47 {dimension_numbers = #tpu.dot_dimension_numbers<[1], [0], [0], [1], [0, 0, 1, 1], [], []>} : vector<8x8xf32>, vector<8x32xf32>, vector<8x32xf32> -> vector<8x32xf32>
      %49 = arith.addf %43, %48 : vector<8x32xf32>
      %50 = vector.extract_strided_slice %38 {offsets = [2, 0, 0], sizes = [1, 8, 8], strides = [1, 1, 1]} : vector<4x8x8xf32> to vector<1x8x8xf32>
      %51 = vector.shape_cast %50 : vector<1x8x8xf32> to vector<8x8xf32>
      %c2 = arith.constant 2 : index
      %c0_48 = arith.constant 0 : index
      %c0_49 = arith.constant 0 : index
      %52 = vector.load %arg7[%c2, %c0_48, %c0_49] : memref<4x8x32xf32, #tpu.memory_space<vmem>>, vector<1x8x32xf32>
      %53 = vector.shape_cast %52 : vector<1x8x32xf32> to vector<8x32xf32>
      %cst_50 = arith.constant dense<0.000000e+00> : vector<8x32xf32>
      %54 = tpu.matmul %51, %53, %cst_50 {dimension_numbers = #tpu.dot_dimension_numbers<[1], [0], [0], [1], [0, 0, 1, 1], [], []>} : vector<8x8xf32>, vector<8x32xf32>, vector<8x32xf32> -> vector<8x32xf32>
      %55 = arith.addf %49, %54 : vector<8x32xf32>
      %56 = vector.extract_strided_slice %38 {offsets = [3, 0, 0], sizes = [1, 8, 8], strides = [1, 1, 1]} : vector<4x8x8xf32> to vector<1x8x8xf32>
      %57 = vector.shape_cast %56 : vector<1x8x8xf32> to vector<8x8xf32>
      %c3 = arith.constant 3 : index
      %c0_51 = arith.constant 0 : index
      %c0_52 = arith.constant 0 : index
      %58 = vector.load %arg7[%c3, %c0_51, %c0_52] : memref<4x8x32xf32, #tpu.memory_space<vmem>>, vector<1x8x32xf32>
      %59 = vector.shape_cast %58 : vector<1x8x32xf32> to vector<8x32xf32>
      %cst_53 = arith.constant dense<0.000000e+00> : vector<8x32xf32>
      %60 = tpu.matmul %57, %59, %cst_53 {dimension_numbers = #tpu.dot_dimension_numbers<[1], [0], [0], [1], [0, 0, 1, 1], [], []>} : vector<8x8xf32>, vector<8x32xf32>, vector<8x32xf32> -> vector<8x32xf32>
      %61 = arith.addf %55, %60 : vector<8x32xf32>
      %c0_54 = arith.constant 0 : index
      %c0_55 = arith.constant 0 : index
      %c0_56 = arith.constant 0 : index
      %62 = vector.load %arg6[%c0_54, %c0_55, %c0_56] : memref<1x8x32xf32, #tpu.memory_space<vmem>>, vector<1x8x32xf32>
      %63 = vector.shape_cast %62 : vector<1x8x32xf32> to vector<8x32xf32>
      %64 = arith.addf %63, %61 : vector<8x32xf32>
      %c0_57 = arith.constant 0 : index
      %c0_58 = arith.constant 0 : index
      %65 = vector.load %arg8[%c0_57, %c0_58] : memref<1x32xf32, #tpu.memory_space<vmem>>, vector<1x32xf32>
      %66 = vector.broadcast %65 : vector<1x32xf32> to vector<8x32xf32>
      %67 = arith.addf %64, %66 : vector<8x32xf32>
      %c0_59 = arith.constant 0 : index
      %c0_60 = arith.constant 0 : index
      %c0_61 = arith.constant 0 : index
      %68 = vector.load %arg9[%c0_59, %c0_60, %c0_61] : memref<1x8x32xf32, #tpu.memory_space<vmem>>, vector<1x8x32xf32>
      %69 = vector.shape_cast %68 : vector<1x8x32xf32> to vector<8x32xf32>
      %70 = vector.shape_cast %67 : vector<8x32xf32> to vector<1x8x32xf32>
      tpu.vector_store %arg9[%c0_59, %c0_60, %c0_61], %70 {strides = array<i32>} : memref<1x8x32xf32, #tpu.memory_space<vmem>>, vector<1x8x32xf32>,
    } else {
    }
    return
  }
  func.func @transform_0(%arg0: i32, %arg1: i32, %arg2: i32) -> (i32, i32, i32, i32) {
    %c0_i32 = arith.constant 0 : i32
    %c0_i32_0 = arith.constant 0 : i32
    %c0_i32_1 = arith.constant 0 : i32
    return %arg0, %c0_i32, %arg1, %c0_i32_0 : i32, i32, i32, i32
  }
  func.func @transform_1(%arg0: i32, %arg1: i32, %arg2: i32) -> (i32, i32, i32, i32) {
    %c0_i32 = arith.constant 0 : i32
    %c0_i32_0 = arith.constant 0 : i32
    %c0_i32_1 = arith.constant 0 : i32
    return %arg0, %c0_i32, %arg2, %c0_i32_0 : i32, i32, i32, i32
  }
  func.func @transform_2(%arg0: i32, %arg1: i32, %arg2: i32) -> (i32, i32, i32, i32) {
    %c0_i32 = arith.constant 0 : i32
    %c0_i32_0 = arith.constant 0 : i32
    %c0_i32_1 = arith.constant 0 : i32
    return %arg0, %c0_i32, %arg2, %c0_i32_0 : i32, i32, i32, i32
  }
  func.func @transform_3(%arg0: i32, %arg1: i32, %arg2: i32) -> (i32, i32, i32) {
    %c0_i32 = arith.constant 0 : i32
    %c0_i32_0 = arith.constant 0 : i32
    return %arg0, %arg1, %c0_i32 : i32, i32, i32
  }
  func.func @transform_4(%arg0: i32, %arg1: i32, %arg2: i32) -> (i32, i32, i32) {
    %c0_i32 = arith.constant 0 : i32
    %c0_i32_0 = arith.constant 0 : i32
    %c0_i32_1 = arith.constant 0 : i32
    %c0_i32_2 = arith.constant 0 : i32
    return %c0_i32, %c0_i32_0, %c0_i32_1 : i32, i32, i32
  }
  func.func @transform_5(%arg0: i32, %arg1: i32, %arg2: i32) -> (i32, i32) {
    %c0_i32 = arith.constant 0 : i32
    %c0_i32_0 = arith.constant 0 : i32
    %c0_i32_1 = arith.constant 0 : i32
    return %c0_i32, %c0_i32_0 : i32, i32
  }
  func.func @transform_6(%arg0: i32, %arg1: i32, %arg2: i32) -> (i32, i32, i32) {
    %c0_i32 = arith.constant 0 : i32
    %c0_i32_0 = arith.constant 0 : i32
    return %arg0, %arg1, %c0_i32 : i32, i32, i32
  }
}

</mosaic_0001>

<bundles_post_ra>
// kernel: transformer_block.5
= control target key start
LH: loop header
LB: loop body
LE: loop exit
PB: predicated region body
PF: predicated region fallthrough
CT: control target
= control target key end

     0   :  { %12 = vsyncpa [#allocation5], 0  ;;  %s1198_s0 = inlined_call_operand.vmem [shape: f32[2,8,32], index: 0, kind: input, shape index: {}]   ;;  %s1199_s1 = inlined_call_operand.vmem [shape: f32[1,32], index: 1, kind: input, shape index: {}]   ;;  %s1200_s2 = inlined_call_operand.vmem [shape: f32[1,32], index: 2, kind: input, shape index: {}]   ;;  %s1201_s3 = inlined_call_operand.vmem [shape: f32[32,128], index: 3, kind: input, shape index: {}]   ;;  %s1202_s4 = inlined_call_operand.vmem [shape: f32[1,128], index: 4, kind: input, shape index: {}]   ;;  %s1203_s5 = inlined_call_operand.vmem [shape: f32[128,32], index: 5, kind: input, shape index: {}]   ;;  %s1204_s6 = inlined_call_operand.vmem [shape: f32[1,32], index: 6, kind: input, shape index: {}]   ;;  %s1205_s7 = inlined_call_operand.hbm [shape: f32[2,8,32], index: 7, kind: output, shape index: {}]  }
   0x1   :  { %14 = vsyncpa [#allocation5 + $0x1], 0  ;;  %s992_s24 = smov 0   ;;  %s994_s25 = smov 0  }
   0x2   :  { %s996_s26 = smov 0   ;;  %s998_s27 = smov 0  }
   0x3   :  { %s1000_s28 = smov 0   ;;  %s1002_s29 = smov 0  }
   0x4 LB: > { %s723_s30 = sadd.s32 4294967295, %s947_s29   ;;  %s724_s8 = sadd.s32 4294967294, %s947_s29   ;;  %s947_s29 = sphi %s1002_s29, %s20_s29   ;;  %s943_s28 = sphi %s1000_s28, %s1212_s28   ;;  %s939_s27 = sphi %s998_s27, %s1211_s27   ;;  %s935_s26 = sphi %s996_s26, %s1210_s26   ;;  %s931_s25 = sphi %s994_s25, %s1209_s25   ;;  %s927_s24 = sphi %s992_s24, %s1208_s24  }
   0x5   : > { %s39_s9 = sadd.s32 1, %s943_s28  ;;  %s217_s10 = sadd.s32 1, %s935_s26 }
   0x6   : > { %p41_p0 = scmp.ge.s32.totalorder %s39_s9, 2  ;;  %p227_p1 = scmp.ne.s32.totalorder %s935_s26, %s931_s25 }
   0x7   : > { %p228_p2 = scmp.eq.s32.totalorder %s723_s30, 1  ;;  %p233_p3 = scmp.ne.s32.totalorder %s931_s25, %s927_s24 }
   0x8   : > { %s1214_s9 = smov (%p41_p0, %s39_s9), 0  ;;  %p234_p5 = scmp.eq.s32.totalorder %s724_s8, 1 }
   0x9   : > { %p1032_p4 = por %p228_p2, %p227_p1  ;;  %s212_s12 = ssub.s32 %s943_s28, %s1214_s9 }
   0xa   : > { %p730_p6 = scmp.ge.s32.totalorder %s947_s29, 1  ;;  %p215_p7 = scmp.eq.s32.totalorder %s212_s12, 0 }
   0xb   : > { %p1039_p8 = por %p234_p5, %p233_p3  ;;  %p293_p9 = scmp.lt.s32.totalorder %s947_s29, 3 }
   0xc   : > { %s1045_s14 = scalar_select %p215_p7, %s935_s26, %s217_s10  }
   0xd   : > { %p294_p10 = pnand %p730_p6, %p293_p9 }
   0xe   : > { %p339_p11 = scmp.lt.s32.totalorder (!%p294_p10), %s939_s27, 1  ;;  %s336_s12 = sand.u32 (!%p294_p10), 1, %s931_s25  }
   0xf   : > { %297 = sbr.rel (%p294_p10) target bundleno = 776 (0x308), region = 48  ;;  %s739_s18 = sshll.u32 (!%p294_p10), %s939_s27, 7 }
  0x10   : > { %s605_s23 = scalar_lea.hbm (!%p294_p10), %s1205_s7, %s739_s18  ;;  %s593_s30 = scalar_lea.sflag (!%p294_p10), [#allocation5], %s336_s12 }
  0x11   : > { %s951_s10 = smov (!%p294_p10), [#allocation4]  }
  0x14   : > { %s340_s15 = scalar_select %p339_p11, %s939_s27, 1  ;;  %vm366_vm0 = vcmask 261120   ;;  %v949_v7 = vmov 0.0   ;;  %v401_v8 = vld [vmem:[%s1201_s3 + $0x18] sm:$0xff]  ;;  %v400_v9 = vld [vmem:[%s1201_s3 + $0x10] sm:$0xff]  ;;  %vm950_vm1 = vmmov 0  }
  0x15   : > { %764 = vmatprep.subr.mxu0 %v949_v7  ;;  %396 = vst.msk [vmem:[#allocation3] sm:$0xff] %vm366_vm0, %v949_v7  ;;  %775 = vmatprep.subr.mxu1 %v949_v7  ;;  %v399_v10 = vld [vmem:[%s1201_s3 + $0x8] sm:$0xff]  ;;  %v398_v11 = vld [vmem:[%s1201_s3] sm:$0xff]  ;;  %v504_v12 = vld [vmem:[%s1203_s5 + $0x78] sm:$0xff]  ;;  %s875_s27 = sshll.u32 %s951_s10, 4  ;;  %s876_s27 = int_to_ptr.vmem [resolvable:$false] %s875_s27 }
  0x16   : > { %s732_s16 = sshll.u32 %s340_s15, 3  ;;  %765 = vmatpush3.msra.mxu0 %v401_v8  ;;  %772 = vmatprep.mubr.msk.f32.mxu0 %vm950_vm1, %v949_v7  ;;  %v503_v13 = vld [vmem:[%s1203_s5 + $0x70] sm:$0xff]  ;;  %v502_v14 = vld [vmem:[%s1203_s5 + $0x68] sm:$0xff]  ;;  %v501_v15 = vld [vmem:[%s1203_s5 + $0x60] sm:$0xff]  ;;  %s731_s15 = sshll.u32 %s336_s12, 3 }
  0x17   : > { %s345_s19 = scalar_lea.vmem %s1198_s0, %s732_s16  ;;  %766 = vmatprep.subr.mxu0 %v949_v7  ;;  %807 = vmatprep.mubr.msk.f32.mxu1 %vm950_vm1, %v949_v7  ;;  %v733_v20 = vld [vmem:[%s1199_s1] ss:$0 sm:$0xff]  ;;  %v500_v26 = vld [vmem:[%s1203_s5 + $0x58] sm:$0xff]  ;;  %v499_v27 = vld [vmem:[%s1203_s5 + $0x50] sm:$0xff] }
  0x18   : > { %v1052_v0 = vld [vmem:[%s345_s19] sm:$0xff]  ;;  %767 = vmatpush3.msra.mxu0 %v400_v9  ;;  %776 = vmatpush3.msra.mxu1 %v504_v12  ;;  %v498_v28 = vld [vmem:[%s1203_s5 + $0x48] sm:$0xff]  ;;  %v496_v30 = vld [vmem:[%s1203_s5 + $0x38] sm:$0xff]  ;;  %s338_s19 = scalar_lea.vmem [#allocation4], %s731_s15  ;;  %s877_s15 = scalar_lea.vmem %s876_s27, 256 }
  0x19   : > { %v367_v1 = vsel %vm366_vm0, %v1052_v0, 0.0  ;;  %768 = vmatprep.subr.mxu0 %v949_v7  ;;  %777 = vmatprep.subr.mxu1 %v949_v7  ;;  %v734_v22 = vld [vmem:[%s1200_s2] ss:$0 sm:$0xff]  ;;  %v495_v31 = vld [vmem:[%s1203_s5 + $0x30] sm:$0xff]  ;;  %v494_v32 = vld [vmem:[%s1203_s5 + $0x28] sm:$0xff]  ;;  %s607_s20 = sshll.u32 %s338_s19, 4  ;;  %s608_s20 = int_to_ptr.vmem [resolvable:$true] %s607_s20 }
  0x1a   : > { %368 = vadd.xlane.f32.xlu0 %v367_v1  ;;  %769 = vmatpush3.msra.mxu0 %v399_v10  ;;  %v497_v29 = vld [vmem:[%s1203_s5 + $0x40] sm:$0xff]  ;;  %v492_v34 = vld [vmem:[%s1203_s5 + $0x18] sm:$0xff]  ;;  %v491_v35 = vld [vmem:[%s1203_s5 + $0x10] sm:$0xff]  ;;  %s871_s8 = scalar_lea.vmem %s608_s20, 128  ;;  %p878_p1 = scmp.lt.s32.totalorder %s608_s20, %s876_s27 }
  0x1b   : > { %770 = vmatprep.subr.mxu0 %v949_v7  ;;  %778 = vmatpush3.msra.mxu1 %v503_v13  ;;  %v493_v33 = vld [vmem:[%s1203_s5 + $0x20] sm:$0xff]  ;;  %v490_v36 = vld [vmem:[%s1203_s5 + $0x8] sm:$0xff]  ;;  %p872_p12 = scmp.ne.s32.totalorder %s608_s20, %s871_s8  ;;  %p879_p2 = scmp.lt.s32.totalorder %s877_s15, %s871_s8 }
  0x1c   : > { %771 = vmatpush3.msra.mxu0 %v398_v11  ;;  %779 = vmatprep.subr.mxu1 %v949_v7  ;;  %v489_v37 = vld [vmem:[%s1203_s5] sm:$0xff]  ;;  %v488_v47 = vld [vmem:[#allocation3] sm:$0xff] }
  0x1d   : > { %780 = vmatpush3.msra.mxu1 %v502_v14  ;;  %v735_v38 = vld [vmem:[%s1202_s4] ss:$0 sm:$0xff]  ;;  %p873_p13 = pnand %p872_p12, %p1032_p4  ;;  %p880_p3 = por %p879_p2, %p878_p1 }
  0x1e   : > { %781 = vmatprep.subr.mxu1 %v949_v7  ;;  %v737_v52 = vld [vmem:[%s1204_s6] ss:$0 sm:$0xff] }
  0x1f   : > { %782 = vmatpush3.msra.mxu1 %v501_v15  ;;  %p874_p0 = pneg %p873_p13 }
  0x20   : > { %783 = vmatprep.subr.mxu1 %v949_v7 }
  0x21   : > { %784 = vmatpush3.msra.mxu1 %v500_v26  ;;  %p881_p5 = pnand %p880_p3, %p874_p0 }
  0x22   : > { %785 = vmatprep.subr.mxu1 %v949_v7 }
  0x23   : > { %786 = vmatpush3.msra.mxu1 %v499_v27 }
  0x24   : > { %787 = vmatprep.subr.mxu1 %v949_v7 }
  0x25   : > { %788 = vmatpush3.msra.mxu1 %v498_v28 }
  0x26   : > { %789 = vmatprep.subr.mxu1 %v949_v7 }
  0x27   : > { %790 = vmatpush3.msra.mxu1 %v497_v29 }
  0x28   : > { %791 = vmatprep.subr.mxu1 %v949_v7 }
  0x29   : > { %792 = vmatpush3.msra.mxu1 %v496_v30 }
  0x2a   : > { %793 = vmatprep.subr.mxu1 %v949_v7 }
  0x2b   : > { %794 = vmatpush3.msra.mxu1 %v495_v31 }
  0x2c   : > { %795 = vmatprep.subr.mxu1 %v949_v7 }
  0x2d   : > { %796 = vmatpush3.msra.mxu1 %v494_v32 }
  0x2e   : > { %797 = vmatprep.subr.mxu1 %v949_v7 }
  0x2f   : > { %798 = vmatpush3.msra.mxu1 %v493_v33 }
  0x30   : > { %799 = vmatprep.subr.mxu1 %v949_v7 }
  0x31   : > { %800 = vmatpush3.msra.mxu1 %v492_v34 }
  0x32   : > { %801 = vmatprep.subr.mxu1 %v949_v7 }
  0x33   : > { %802 = vmatpush3.msra.mxu1 %v491_v35 }
  0x34   : > { %803 = vmatprep.subr.mxu1 %v949_v7 }
  0x35   : > { %804 = vmatpush3.msra.mxu1 %v490_v36 }
  0x36   : > { %805 = vmatprep.subr.mxu1 %v949_v7 }
  0x37   : > { %806 = vmatpush3.msra.mxu1 %v489_v37 }
  0xa3   : > { %v369_v2 = vpop.xlane.xlu0 %368 }
  0xa4   : > { %v371_v3 = vmul.f32 0.03125, %v369_v2 }
  0xa6   : > { %v372_v4 = vsub.f32 %v1052_v0, %v371_v3 }
  0xa8   : > { %v373_v5 = vmul.f32 %v372_v4, %v372_v4 }
  0xaa   : > { %v374_v6 = vsel %vm366_vm0, %v373_v5, 0.0 }
  0xab   : > { %375 = vadd.xlane.f32.xlu0 %v374_v6 }
 0x134   : > { %v376_v16 = vpop.xlane.xlu0 %375 }
 0x135   : > { %v377_v17 = vmul.f32 0.03125, %v376_v16 }
 0x137   : > { %v378_v18 = vadd.f32 1e-05, %v377_v17 }
 0x139   : > { %867 = vrsqrt.f32 %v378_v18 }
 0x146   : > { %v868_v19 = vpop.eup %867 }
 0x147   : > { %v380_v21 = vmul.f32 %v868_v19, %v372_v4 }
 0x149   : > { %v387_v23 = vmul.f32 %v733_v20, %v380_v21 }
 0x14b   : > { %v394_v24 = vadd.f32 %v734_v22, %v387_v23 }
 0x14d   : > { %395 = vst.msk [vmem:[#allocation2] sm:$0xff] %vm366_vm0, %v394_v24 }
 0x154   : > { %v397_v25 = vld [vmem:[#allocation2] sm:$0xff] }
 0x155   : > { %773 = vmatmul.mubr.msk.f32.vlgmr.msra.gmra.mxu0 %vm366_vm0, %v397_v25 }
 0x215   : > { %v479_v39 = vpop.f32.mrf.mxu0 }
 0x216   : > { %v480_v40 = vadd.f32 %v735_v38, %v479_v39 }
 0x217   : > { %v774_v41 = vpop.f32.mrf.mxu0 }
 0x218   : > { %v484_v42 = vmul.f32 0.70710677, %v480_v40  ;;  %v483_v44 = vmul.f32 0.5, %v480_v40 }
 0x21a   : > { %869 = verf.f32 %v484_v42 }
 0x227   : > { %v870_v43 = vpop.eup %869 }
 0x228   : > { %v486_v45 = vadd.f32 1.0, %v870_v43 }
 0x22a   : > { %v487_v46 = vmul.f32 %v486_v45, %v483_v44 }
 0x22c   : > { %808 = vmatmul.mubr.f32.vlgmr.msra.gmra.mxu1 %v487_v46 }
 0x2ec   : > { %v571_v48 = vpop.f32.mrf.mxu1 }
 0x2ed   : > { %v575_v49 = vadd.f32 %v571_v48, %v488_v47 }
 0x2ee   : > { %v809_v50 = vpop.f32.mrf.mxu1 }
 0x2ef   : > { %576 = vst.msk [vmem:[#allocation3] sm:$0xff] %vm366_vm0, %v575_v49 }
 0x2f6   : > { %v581_v51 = vld [vmem:[#allocation3] sm:$0xff] }
 0x2f7   : > { %v582_v53 = vadd.f32 %v581_v51, %v1052_v0 }
 0x2f9   : > { %v590_v54 = vadd.f32 %v737_v52, %v582_v53 }
 0x2fb   : > { %591 = vst.msk [vmem:[%s338_s19] sm:$0xff] %vm366_vm0, %v590_v54 }
 0x2fc   : > { %884 = shalt.err (!%p881_p5)
}
 0x2fd   : > { %s885_s16 = scalar_lea.hbm %s605_s23, 128  ;;  %s889_s18 = scalar_lea.hbm %s1205_s7, 256 }
 0x2fe   : > { %p886_p6 = scmp.ne.s32.totalorder %s605_s23, %s885_s16  ;;  %p890_p10 = scmp.lt.s32.totalorder %s605_s23, %s1205_s7 }
 0x2ff   : > { %p891_p11 = scmp.lt.s32.totalorder %s889_s18, %s885_s16 }
 0x300   : > { %p887_p7 = pnand %p886_p6, %p1032_p4 }
 0x301   : > { %p892_p12 = por %p891_p11, %p890_p10 }
 0x302   : > { %p888_p9 = pneg %p887_p7 }
 0x304   : > { %p893_p13 = pnand %p892_p12, %p888_p9 }
 0x306   : > { %896 = shalt.err (!%p893_p13)
}
 0x307   : > { %810 = dma.vmem_to_hbm [thread:$0]  (%p1032_p4), %s608_s20, 128, %s605_s23, %s593_s30  }
 0x308 PF: > { %p816_p0 = scmp.ge.s32.totalorder %s947_s29, 2  ;;  %s619_s22 = sand.u32 1, %s927_s24  }
 0x309   : > { %s620_s8 = scalar_lea.sflag [#allocation5], %s619_s22 }
 0x30a   : > { %p813_p1 = pnand %p816_p0, %p1039_p8 }
 0x30c   : > { %p814_p2 = pneg %p813_p1 }
 0x30e   : > { %922 = dma.done.wait (%p814_p2), %s620_s8, 128  }
 0x30f   : > { %924 = vsyncadd (%p814_p2), %s620_s8, 4294967168  ;;  %s20_s29 = sadd.s32 1, %s947_s29   ;;  %s1208_s24 = smov %s931_s25 }
 0x310   : > { %p17_p3 = scmp.ge.s32.totalorder %s20_s29, 4   ;;  %s1209_s25 = smov %s935_s26 }
 0x311   : > { %s1210_s26 = smov %s1045_s14  ;;  %s1211_s27 = smov %s943_s28 }
 0x312   : > { %s1212_s28 = smov %s1214_s9  ;;  %19 = sbr.rel (!%p17_p3) target bundleno = 4 (0x4), region = 100 }
 0x317   :  { %625 = vsyncpa [#allocation5], 1 }
 0x318   :  { %627 = vsyncpa [#allocation5 + $0x1], 1 }

// kernel: transformer_block.3
= control target key start
LH: loop header
LB: loop body
LE: loop exit
PB: predicated region body
PF: predicated region fallthrough
CT: control target
= control target key end

     0   :  { %13 = vsyncpa [#allocation3], 0  ;;  %s1203_s0 = inlined_call_operand.hbm [shape: f32[2,8,32], index: 0, kind: input, shape index: {}]   ;;  %s1204_s1 = inlined_call_operand.vmem [shape: f32[1,32], index: 1, kind: input, shape index: {}]   ;;  %s1205_s2 = inlined_call_operand.vmem [shape: f32[1,32], index: 2, kind: input, shape index: {}]   ;;  %s1206_s3 = inlined_call_operand.hbm [shape: f32[32,96], index: 3, kind: input, shape index: {}]   ;;  %s1207_s4 = inlined_call_operand.vmem [shape: f32[1,96], index: 4, kind: input, shape index: {}]   ;;  %s1208_s5 = inlined_call_operand.vmem [shape: f32[2,4,8,8], index: 5, kind: output, shape index: {0}]   ;;  %s1209_s6 = inlined_call_operand.vmem [shape: f32[2,4,8,8], index: 6, kind: output, shape index: {1}]   ;;  %s1210_s7 = inlined_call_operand.vmem [shape: f32[2,4,8,8], index: 7, kind: output, shape index: {2}]  }
   0x1   :  { %15 = vsyncpa [#allocation3 + $0x1], 0 }
   0x2   :  { %16 = vsyncpa [#allocation5], 0  ;;  %s1041_s24 = smov 0   ;;  %s1043_s25 = smov 0  }
   0x3   :  { %s1045_s26 = smov 0   ;;  %s1047_s27 = smov 0  }
   0x4   :  { %s1049_s28 = smov 0   ;;  %s1051_s29 = smov 0  }
   0x5 LB: > { %s741_s30 = sadd.s32 4294967295, %s982_s29   ;;  %p56_p0 = scmp.ne.s32.totalorder %s966_s25, %s962_s24  ;;  %s982_s29 = sphi %s1051_s29, %s22_s29   ;;  %s978_s28 = sphi %s1049_s28, %s1220_s28   ;;  %s974_s27 = sphi %s1047_s27, %s1219_s27   ;;  %s970_s26 = sphi %s1045_s26, %s1218_s26   ;;  %s966_s25 = sphi %s1043_s25, %s1217_s25   ;;  %s962_s24 = sphi %s1041_s24, %s1216_s24  }
   0x6   : > { %p1071_p1 = scmp.eq.s32.totalorder %s741_s30, 0  ;;  %p743_p2 = scmp.ge.s32.totalorder %s982_s29, 1 }
   0x7   : > { %p235_p3 = scmp.lt.s32.totalorder %s982_s29, 3  ;;  %s984_s11 = smov [#allocation4]  }
   0x8   : > { %p1079_p4 = por %p1071_p1, %p56_p0  ;;  %s253_s12 = sshll.u32 %s984_s11, 4  ;;  %s254_s12 = int_to_ptr.vmem [resolvable:$true] %s253_s12 }
   0x9   : > { %p1083_p5 = pnand %p743_p2, %p235_p3  ;;  %s34_s14 = sadd.s32 1, %s978_s28 }
   0xa   : > { %s885_s15 = scalar_lea.vmem %s254_s12, 512  ;;  %p893_p12 = scmp.lt.s32.totalorder %s254_s12, %s254_s12 }
   0xb   : > { %p797_p6 = pneg %p1083_p5  ;;  %p886_p9 = scmp.ne.s32.totalorder %s254_s12, %s885_s15 }
   0xc   : > { %p894_p13 = scmp.lt.s32.totalorder %s885_s15, %s885_s15 }
   0xd   : > { %p1091_p7 = pnand %p797_p6, %p1071_p1 }
   0xe   : > { %p895_p0 = por %p894_p13, %p893_p12 }
   0xf   : > { %p876_p8 = pneg %p1091_p7 }
  0x11   : > { %p888_p10 = pnand %p886_p9, %p876_p8 }
  0x13   : > { %p889_p11 = pneg %p888_p10 }
  0x15   : > { %p896_p2 = pnand %p895_p0, %p889_p11 }
  0x17   : > { %899 = shalt.err (!%p896_p2)
}
  0x18   : > { %s985_s16 = smov 128   ;;  %s986_s17 = smov 8  }
  0x19   : > { %800 = dma.hbm_to_vmem [thread:$0]  (!%p1091_p7), %s1206_s3, 512, %s254_s12, [#allocation5], %s985_s16, %s985_s16, %s986_s17  }
  0x1a   : > { %p36_p3 = scmp.ge.s32.totalorder %s34_s14, 2  ;;  %s43_s20 = sadd.s32 1, %s970_s26 }
  0x1b   : > { %p50_p6 = scmp.ne.s32.totalorder %s970_s26, %s966_s25  ;;  %p51_p8 = scmp.eq.s32.totalorder %s982_s29, 0 }
  0x1c   : > { %s1222_s14 = smov (%p36_p3, %s34_s14), 0  ;;  %p806_p10 = scmp.lt.s32.totalorder %s982_s29, 2 }
  0x1d   : > { %p52_p9 = por %p51_p8, %p50_p6  ;;  %s38_s21 = ssub.s32 %s978_s28, %s1222_s14 }
  0x1e   : > { %s270_s22 = sand.u32 1, %s970_s26   ;;  %p41_p11 = scmp.eq.s32.totalorder %s38_s21, 0 }
  0x1f   : > { %s746_s23 = sshll.u32 %s270_s22, 3  ;;  %s747_s24 = sshll.u32 %s978_s28, 7 }
  0x20   : > { %s1115_s30 = scalar_select %p41_p11, %s970_s26, %s43_s20  }
  0x21   : > { %s280_s12 = scalar_lea.hbm %s1203_s0, %s747_s24  ;;  %s274_s15 = scalar_lea.vmem [#allocation2], %s746_s23 }
  0x22   : > { %s282_s16 = sshll.u32 %s274_s15, 4  ;;  %p1120_p7 = pnand %p806_p10, %p52_p9  ;;  %s283_s16 = int_to_ptr.vmem [resolvable:$true] %s282_s16 }
  0x23   : > { %s271_s18 = scalar_lea.sflag [#allocation3], %s270_s22  ;;  %s913_s19 = scalar_lea.vmem %s283_s16, 128 }
  0x24   : > { %p902_p12 = pneg %p1120_p7  ;;  %p914_p13 = scmp.ne.s32.totalorder %s283_s16, %s913_s19 }
  0x25   : > { %s987_s20 = smov [#allocation2]  }
  0x26   : > { %p916_p0 = pnand %p914_p13, %p902_p12  ;;  %s918_s21 = sshll.u32 %s987_s20, 4  ;;  %s919_s21 = int_to_ptr.vmem [resolvable:$false] %s918_s21 }
  0x27   : > { %s920_s11 = scalar_lea.vmem %s919_s21, 256  ;;  %p921_p3 = scmp.lt.s32.totalorder %s283_s16, %s919_s21 }
  0x28   : > { %p917_p2 = pneg %p916_p0  ;;  %p922_p6 = scmp.lt.s32.totalorder %s920_s11, %s913_s19 }
  0x2a   : > { %p923_p8 = por %p922_p6, %p921_p3 }
  0x2c   : > { %p924_p9 = pnand %p923_p8, %p917_p2 }
  0x2e   : > { %927 = shalt.err (!%p924_p9)
}
  0x2f   : > { %804 = dma.hbm_to_vmem [thread:$0]  (!%p1120_p7), %s280_s12, 128, %s283_s16, %s271_s18  }
  0x30   : > { %291 = sbr.rel (%p1083_p5) target bundleno = 708 (0x2c4), region = 40  ;;  %s293_s22 = sand.u32 (!%p1083_p5), 1, %s966_s25  }
  0x31   : > { %s749_s23 = sshll.u32 (!%p1083_p5), %s293_s22, 3  ;;  %s294_s24 = scalar_lea.sflag (!%p1083_p5), [#allocation3], %s293_s22 }
  0x32   : > { %s297_s13 = scalar_lea.vmem (!%p1083_p5), [#allocation2], %s749_s23 }
  0x35   : > { %953 = dma.done.wait (%p1079_p4), %s294_s24, 128  }
  0x36   : > { %955 = vsyncadd (%p1079_p4), %s294_s24, 4294967168 }
  0x37   : > { %957 = dma.done.wait (%p1071_p1), [#allocation5], 512  }
  0x38   : > { %959 = vsyncadd (%p1071_p1), [#allocation5], 4294966784  ;;  %vm378_vm0 = vcmask 261120   ;;  %v375_v0 = vld [vmem:[%s297_s13] sm:$0xff]  ;;  %v988_v8 = vmov 0.0   ;;  %vm989_vm1 = vmmov 0  }
  0x39   : > { %v379_v1 = vsel %vm378_vm0, %v375_v0, 0.0  ;;  %v410_v7 = vld [vmem:[#allocation4 + $0x18] sm:$0xff]  ;;  %780 = vmatprep.subr.mxu0 %v988_v8  ;;  %v409_v9 = vld [vmem:[#allocation4 + $0x10] sm:$0xff]  ;;  %788 = vmatprep.mubr.msk.f32.mxu0 %vm989_vm1, %v988_v8  ;;  %v408_v10 = vld [vmem:[#allocation4 + $0x8] sm:$0xff]  ;;  %p351_p1 = scmp.lt.s32.totalorder %s974_s27, 1  ;;  %vm491_vm2 = vcmask 64512  }
  0x3a   : > { %380 = vadd.xlane.f32.xlu0 %v379_v1  ;;  %781 = vmatpush3.msra.mxu0 %v410_v7  ;;  %v407_v11 = vld [vmem:[#allocation4] sm:$0xff]  ;;  %v757_v16 = vld [vmem:[%s1204_s1] ss:$0 sm:$0xff]  ;;  %s990_s21 = smov 120   ;;  %s991_s11 = smov 96  }
  0x3b   : > { %782 = vmatprep.subr.mxu0 %v988_v8  ;;  %v758_v18 = vld [vmem:[%s1205_s2] ss:$0 sm:$0xff]  ;;  %s1224_s27 = smov (!%p351_p1, %s974_s27), 1  ;;  %s993_s22 = smov 64  }
  0x3c   : > { %783 = vmatpush3.msra.mxu0 %v409_v9  ;;  %s1150_s15 = sshll.u32 %s1224_s27, 5  ;;  %v759_v21 = vld [vmem:[%s1207_s4] ss:$0 sm:$0xff]  ;;  %s992_s27 = smov 72  }
  0x3d   : > { %784 = vmatprep.subr.mxu0 %v988_v8  ;;  %s1159_s20 = scalar_lea.vmem %s1208_s5, %s1150_s15  ;;  %s994_s23 = smov 88  }
  0x3e   : > { %785 = vmatpush3.msra.mxu0 %v408_v10  ;;  %s995_s24 = smov 56   ;;  %s996_s13 = smov 112  }
  0x3f   : > { %786 = vmatprep.subr.mxu0 %v988_v8  ;;  %s997_s8 = smov 80   ;;  %s998_s9 = smov 48  }
  0x40   : > { %787 = vmatpush3.msra.mxu0 %v407_v11  ;;  %s999_s10 = smov 104   ;;  %s1000_s12 = smov 40  }
  0x41   : > { %s366_s18 = scalar_lea.vmem %s1209_s6, %s1150_s15 }
  0xc3   : > { %v381_v2 = vpop.xlane.xlu0 %380 }
  0xc4   : > { %v383_v3 = vmul.f32 0.03125, %v381_v2 }
  0xc6   : > { %v384_v4 = vsub.f32 %v375_v0, %v383_v3 }
  0xc8   : > { %v385_v5 = vmul.f32 %v384_v4, %v384_v4 }
  0xca   : > { %v386_v6 = vsel %vm378_vm0, %v385_v5, 0.0 }
  0xcb   : > { %387 = vadd.xlane.f32.xlu0 %v386_v6 }
 0x154   : > { %v388_v12 = vpop.xlane.xlu0 %387 }
 0x155   : > { %v389_v13 = vmul.f32 0.03125, %v388_v12 }
 0x157   : > { %v390_v14 = vadd.f32 1e-05, %v389_v13 }
 0x159   : > { %872 = vrsqrt.f32 %v390_v14 }
 0x166   : > { %v873_v15 = vpop.eup %872 }
 0x167   : > { %v392_v17 = vmul.f32 %v873_v15, %v384_v4 }
 0x169   : > { %v399_v19 = vmul.f32 %v757_v16, %v392_v17 }
 0x16b   : > { %v406_v20 = vadd.f32 %v758_v18, %v399_v19 }
 0x16d   : > { %789 = vmatmul.mubr.msk.f32.vlgmr.msra.gmra.mxu0 %vm378_vm0, %v406_v20 }
 0x22d   : > { %v487_v22 = vpop.f32.mrf.mxu0 }
 0x22e   : > { %v488_v23 = vadd.f32 %v759_v21, %v487_v22 }
 0x22f   : > { %v790_v24 = vpop.f32.mrf.mxu0 }
 0x230   : > { %502 = vrot.lane.b32.xlu0 %v488_v23, %s990_s21  ;;  %494 = vrot.lane.b32.xlu1 %v488_v23, %s991_s11  ;;  %492 = vst.msk [vmem:[%s1159_s20] sm:$0xff] %vm491_vm2, %v488_v23  ;;  %s374_s11 = scalar_lea.vmem %s1210_s7, %s1150_s15 }
 0x234   : > { %537 = vrot.lane.b32.xlu0 %v488_v23, %s992_s27  ;;  %498 = vrot.lane.b32.xlu1 %v488_v23, %s993_s22 }
 0x238   : > { %507 = vrot.lane.b32.xlu1 %v488_v23, %s994_s23 }
 0x23c   : > { %512 = vrot.lane.b32.xlu1 %v488_v23, %s995_s24 }
 0x240   : > { %517 = vrot.lane.b32.xlu1 %v488_v23, %s996_s13 }
 0x244   : > { %522 = vrot.lane.b32.xlu1 %v488_v23, %s997_s8 }
 0x248   : > { %527 = vrot.lane.b32.xlu1 %v488_v23, %s998_s9 }
 0x24c   : > { %532 = vrot.lane.b32.xlu1 %v488_v23, %s999_s10 }
 0x250   : > { %542 = vrot.lane.b32.xlu1 %v488_v23, %s1000_s12 }
 0x2a2   : > { %v503_v25 = vpop.permute.xlu0 %502  ;;  %v495_v26 = vpop.permute.xlu1 %494 }
 0x2a3   : > { %761 = vst.msk [vmem:[%s1159_s20 + $0x8] sm:$0xff] %vm491_vm2, %v503_v25  ;;  %497 = vst.msk [vmem:[%s366_s18] sm:$0xff] %vm491_vm2, %v495_v26 }
 0x2a6   : > { %v538_v27 = vpop.permute.xlu0 %537  ;;  %v499_v28 = vpop.permute.xlu1 %498 }
 0x2a7   : > { %768 = vst.msk [vmem:[%s366_s18 + $0x18] sm:$0xff] %vm491_vm2, %v538_v27  ;;  %501 = vst.msk [vmem:[%s374_s11] sm:$0xff] %vm491_vm2, %v499_v28 }
 0x2aa   : > { %v508_v29 = vpop.permute.xlu1 %507 }
 0x2ab   : > { %762 = vst.msk [vmem:[%s366_s18 + $0x8] sm:$0xff] %vm491_vm2, %v508_v29 }
 0x2ae   : > { %v513_v30 = vpop.permute.xlu1 %512 }
 0x2af   : > { %763 = vst.msk [vmem:[%s374_s11 + $0x8] sm:$0xff] %vm491_vm2, %v513_v30 }
 0x2b2   : > { %v518_v31 = vpop.permute.xlu1 %517 }
 0x2b3   : > { %764 = vst.msk [vmem:[%s1159_s20 + $0x10] sm:$0xff] %vm491_vm2, %v518_v31 }
 0x2b6   : > { %v523_v32 = vpop.permute.xlu1 %522 }
 0x2b7   : > { %765 = vst.msk [vmem:[%s366_s18 + $0x10] sm:$0xff] %vm491_vm2, %v523_v32 }
 0x2ba   : > { %v528_v33 = vpop.permute.xlu1 %527 }
 0x2bb   : > { %766 = vst.msk [vmem:[%s374_s11 + $0x10] sm:$0xff] %vm491_vm2, %v528_v33 }
 0x2be   : > { %v533_v34 = vpop.permute.xlu1 %532 }
 0x2bf   : > { %767 = vst.msk [vmem:[%s1159_s20 + $0x18] sm:$0xff] %vm491_vm2, %v533_v34 }
 0x2c2   : > { %v543_v35 = vpop.permute.xlu1 %542 }
 0x2c3   : > { %769 = vst.msk [vmem:[%s374_s11 + $0x18] sm:$0xff] %vm491_vm2, %v543_v35 }
 0x2c4 PF: > { %s22_s29 = sadd.s32 1, %s982_s29   ;;  %s1216_s24 = smov %s966_s25 }
 0x2c5   : > { %p19_p4 = scmp.ge.s32.totalorder %s22_s29, 4   ;;  %s1217_s25 = smov %s970_s26 }
 0x2c6   : > { %s1218_s26 = smov %s1115_s30  ;;  %s1219_s27 = smov %s978_s28 }
 0x2c7   : > { %s1220_s28 = smov %s1222_s14  ;;  %21 = sbr.rel (!%p19_p4) target bundleno = 5 (0x5), region = 117 }
 0x2cc   :  { %618 = vsyncpa [#allocation3], 1 }
 0x2cd   :  { %620 = vsyncpa [#allocation3 + $0x1], 1 }
 0x2ce   :  { %621 = vsyncpa [#allocation5], 1 }

// kernel: transformer_block.4
= control target key start
LH: loop header
LB: loop body
LE: loop exit
PB: predicated region body
PF: predicated region fallthrough
CT: control target
= control target key end

     0   :  { %s1860_s21 = smov 0   ;;  %s1862_s22 = smov 0   ;;  %s2044_s0 = inlined_call_operand.vmem [shape: f32[2,4,8,8], index: 0, kind: input, shape index: {}]   ;;  %s2045_s1 = inlined_call_operand.vmem [shape: f32[2,4,8,8], index: 1, kind: input, shape index: {}]   ;;  %s2046_s2 = inlined_call_operand.vmem [shape: f32[2,4,8,8], index: 2, kind: input, shape index: {}]   ;;  %s2047_s3 = inlined_call_operand.vmem [shape: f32[2,8,32], index: 3, kind: input, shape index: {}]   ;;  %s2048_s4 = inlined_call_operand.vmem [shape: f32[4,8,32], index: 4, kind: input, shape index: {}]   ;;  %s2049_s5 = inlined_call_operand.vmem [shape: f32[1,32], index: 5, kind: input, shape index: {}]   ;;  %s2050_s6 = inlined_call_operand.vmem [shape: f32[2,8,32], index: 6, kind: output, shape index: {}]  }
   0x1   :  { %s1864_s23 = smov 0  }
   0x2 LB: > { %s35_s24 = sadd.s32 1, %s1815_s22  ;;  %p1625_p0 = scmp.ge.s32.totalorder %s1819_s23, 1  ;;  %s1819_s23 = sphi %s1864_s23, %s16_s23   ;;  %s1815_s22 = sphi %s1862_s22, %s2052_s22   ;;  %s1811_s21 = sphi %s1860_s21, %s2051_s21  }
   0x3   : > { %p37_p1 = scmp.ge.s32.totalorder %s35_s24, 2  ;;  %p282_p2 = scmp.lt.s32.totalorder %s1819_s23, 3 }
   0x5   : > { %s2054_s24 = smov (%p37_p1, %s35_s24), 0  ;;  %p283_p3 = pnand %p1625_p0, %p282_p2 }
   0x6   : > { %p340_p4 = scmp.lt.s32.totalorder (!%p283_p3), %s1811_s21, 1 }
   0x7   : > { %286 = sbr.rel (%p283_p3) target bundleno = 1000 (0x3e8), region = 44 }
   0xc   : > { %vm391_vm0 = vcmask 64512   ;;  %v1821_v0 = vmov 0.0   ;;  %s2056_s21 = smov (!%p340_p4, %s1811_s21), 1  ;;  %vm1822_vm1 = vmmov 0   ;;  %vm382_vm2 = vcmask 7168  }
   0xd   : > { %1683 = vmatprep.subr.mxu0 %v1821_v0  ;;  %392 = vst.msk [vmem:[#allocation4] sm:$0xff] %vm391_vm0, %v1821_v0  ;;  %393 = vst.msk [vmem:[#allocation4 + $0x8] sm:$0xff] %vm391_vm0, %v1821_v0  ;;  %1688 = vmatprep.subr.mxu1 %v1821_v0  ;;  %s1895_s25 = sshll.u32 %s2056_s21, 5  ;;  %v1823_v9 = vmov -inf   ;;  %v1824_v22 = vmov 0   ;;  %s1632_s19 = sshll.u32 %s2056_s21, 3 }
   0xe   : > { %394 = vst.msk [vmem:[#allocation4 + $0x10] sm:$0xff] %vm391_vm0, %v1821_v0  ;;  %395 = vst.msk [vmem:[#allocation4 + $0x18] sm:$0xff] %vm391_vm0, %v1821_v0  ;;  %1685 = vmatprep.mubr.msk.f32.mxu0 %vm1822_vm1, %v1821_v0  ;;  %1690 = vmatprep.mubr.msk.f32.mxu1 %vm1822_vm1, %v1821_v0  ;;  %s355_s28 = scalar_lea.vmem %s2045_s1, %s1895_s25  ;;  %s347_s7 = scalar_lea.vmem %s2044_s0, %s1895_s25  ;;  %vm1488_vm3 = vcmask 261120  }
   0xf   : > { %v400_v1 = vld [vmem:[%s355_s28] sm:$0xff]  ;;  %v401_v2 = vld [vmem:[%s355_s28 + $0x8] sm:$0xff]  ;;  %v402_v5 = vld [vmem:[%s355_s28 + $0x10] sm:$0xff]  ;;  %383 = vst.msk [vmem:[#allocation2] sm:$0xff] %vm382_vm2, %v1823_v9  ;;  %1771 = vset.pattern.permute.xlu0 %v1824_v22  ;;  %1772 = vset.pattern.permute.xlu1 %v1824_v22  ;;  %s1966_s10 = scalar_lea.vmem %s2046_s2, %s1895_s25  ;;  %s370_s26 = scalar_lea.vmem %s2047_s3, %s1632_s19 }
  0x10   : > { %1684 = vmatpush3.xpose.msk.msra.mxu0 %vm391_vm0, %v400_v1  ;;  %1689 = vmatpush3.xpose.msk.msra.mxu1 %vm391_vm0, %v401_v2  ;;  %v396_v3 = vld [vmem:[%s347_s7] sm:$0xff]  ;;  %v397_v4 = vld [vmem:[%s347_s7 + $0x8] sm:$0xff]  ;;  %v403_v6 = vld [vmem:[%s355_s28 + $0x18] sm:$0xff]  ;;  %384 = vst.msk [vmem:[#allocation2 + $0x8] sm:$0xff] %vm382_vm2, %v1823_v9  ;;  %s377_s21 = scalar_lea.vmem %s2050_s6, %s1632_s19 }
  0x11   : > { %1693 = vmatprep.subr.mxu0 %v1821_v0  ;;  %1698 = vmatprep.subr.mxu1 %v1821_v0  ;;  %v398_v7 = vld [vmem:[%s347_s7 + $0x10] sm:$0xff]  ;;  %v399_v8 = vld [vmem:[%s347_s7 + $0x18] sm:$0xff]  ;;  %385 = vst.msk [vmem:[#allocation2 + $0x10] sm:$0xff] %vm382_vm2, %v1823_v9  ;;  %386 = vst.msk [vmem:[#allocation2 + $0x18] sm:$0xff] %vm382_vm2, %v1823_v9 }
  0x12   : > { %387 = vst.msk [vmem:[#allocation3] sm:$0xff] %vm382_vm2, %v1821_v0  ;;  %388 = vst.msk [vmem:[#allocation3 + $0x8] sm:$0xff] %vm382_vm2, %v1821_v0  ;;  %v830_v39 = vld [vmem:[%s1966_s10] sm:$0xff]  ;;  %v831_v40 = vld [vmem:[%s1966_s10 + $0x8] sm:$0xff] }
  0x13   : > { %1686 = vmatmul.mubr.msk.f32.vlgmr.msra.gmra.mxu0 %vm391_vm0, %v396_v3  ;;  %1691 = vmatmul.mubr.msk.f32.vlgmr.msra.gmra.mxu1 %vm391_vm0, %v397_v4  ;;  %389 = vst.msk [vmem:[#allocation3 + $0x10] sm:$0xff] %vm382_vm2, %v1821_v0  ;;  %390 = vst.msk [vmem:[#allocation3 + $0x18] sm:$0xff] %vm382_vm2, %v1821_v0  ;;  %v832_v53 = vld [vmem:[%s1966_s10 + $0x10] sm:$0xff]  ;;  %v833_v56 = vld [vmem:[%s1966_s10 + $0x18] sm:$0xff] }
  0x14   : > { %1694 = vmatpush3.xpose.msk.msra.mxu0 %vm391_vm0, %v402_v5  ;;  %1695 = vmatprep.mubr.msk.f32.mxu0 %vm1822_vm1, %v1821_v0 }
  0x15   : > { %1699 = vmatpush3.xpose.msk.msra.mxu1 %vm391_vm0, %v403_v6  ;;  %1700 = vmatprep.mubr.msk.f32.mxu1 %vm1822_vm1, %v1821_v0 }
  0x16   : > { %1703 = vmatprep.subr.mxu0 %v1821_v0  ;;  %1708 = vmatprep.subr.mxu1 %v1821_v0  ;;  %v1941_v23 = vld [vmem:[#allocation2] sm:$0xff] }
  0x17   : > { %1696 = vmatmul.mubr.msk.f32.vlgmr.msra.gmra.mxu0 %vm391_vm0, %v398_v7  ;;  %v710_v26 = vld [vmem:[#allocation2 + $0x8] sm:$0xff] }
  0x18   : > { %1701 = vmatmul.mubr.msk.f32.vlgmr.msra.gmra.mxu1 %vm391_vm0, %v399_v8  ;;  %1705 = vmatprep.mubr.msk.f32.mxu0 %vm1822_vm1, %v1821_v0  ;;  %v1946_v27 = vld [vmem:[#allocation2 + $0x10] sm:$0xff]  ;;  %v1954_v33 = vld [vmem:[#allocation2 + $0x18] sm:$0xff] }
  0x19   : > { %1710 = vmatprep.mubr.msk.f32.mxu1 %vm1822_vm1, %v1821_v0  ;;  %1704 = vmatpush3.msra.mxu0 %v830_v39  ;;  %v773_v8 = vld [vmem:[#allocation3] sm:$0xff] }
  0x1a   : > { %1713 = vmatprep.subr.mxu0 %v1821_v0  ;;  %1709 = vmatpush3.msra.mxu1 %v831_v40  ;;  %v804_v40 = vld [vmem:[#allocation4 + $0x10] sm:$0xff] }
  0x1b   : > { %1718 = vmatprep.subr.mxu1 %v1821_v0 }
  0xd3   : > { %v477_v10 = vpop.f32.mrf.mxu0  ;;  %v553_v11 = vpop.f32.mrf.mxu1 }
  0xd4   : > { %v713_v12 = vsel %vm391_vm0, %v477_v10, -inf  ;;  %v716_v15 = vsel %vm391_vm0, %v553_v11, -inf }
  0xd5   : > { %714 = vmax.xlane.f32.xlu0 %v713_v12  ;;  %v1687_v13 = vpop.f32.mrf.mxu0  ;;  %v1692_v14 = vpop.f32.mrf.mxu1 }
  0xd7   : > { %v629_v16 = vpop.f32.mrf.mxu0 }
  0xd8   : > { %v719_v17 = vsel %vm391_vm0, %v629_v16, -inf  ;;  %v705_v18 = vpop.f32.mrf.mxu1 }
  0xd9   : > { %717 = vmax.xlane.f32.xlu0 %v716_v15  ;;  %720 = vmax.xlane.f32.xlu1 %v719_v17  ;;  %v1697_v19 = vpop.f32.mrf.mxu0  ;;  %v722_v20 = vsel %vm391_vm0, %v705_v18, -inf  ;;  %v775_v15 = vld [vmem:[#allocation3 + $0x10] sm:$0xff] }
  0xda   : > { %v1702_v21 = vpop.f32.mrf.mxu1  ;;  %v776_v19 = vld [vmem:[#allocation3 + $0x18] sm:$0xff] }
  0xdd   : > { %723 = vmax.xlane.f32.xlu1 %v722_v20 }
 0x15e   : > { %v715_v24 = vpop.xlane.xlu0 %714 }
 0x15f   : > { %v1944_v25 = vmax.f32 %v1941_v23, %v715_v24 }
 0x161   : > { %v729_v28 = vsub.f32 %v1941_v23, %v1944_v25  ;;  %1134 = vst.msk [vmem:[#allocation2] sm:$0xff] %vm382_vm2, %v1944_v25  ;;  %743 = vperm.xlu0 %1771, %v1944_v25  }
 0x162   : > { %v718_v29 = vpop.xlane.xlu0 %717  ;;  %v721_v30 = vpop.xlane.xlu1 %720 }
 0x163   : > { %v726_v31 = vmax.f32 %v710_v26, %v718_v29  ;;  %v727_v32 = vmax.f32 %v1946_v27, %v721_v30  ;;  %v733_v1 = vmul.f32 1.442695, %v729_v28  ;;  %v1177_v29 = vld [vmem:[%s2048_s4] sm:$0xff] }
 0x165   : > { %v730_v34 = vsub.f32 %v710_v26, %v726_v31  ;;  %1135 = vst.msk [vmem:[#allocation2 + $0x8] sm:$0xff] %vm382_vm2, %v726_v31  ;;  %748 = vperm.xlu1 %1772, %v726_v31   ;;  %v731_v35 = vsub.f32 %v1946_v27, %v727_v32  ;;  %1136 = vst.msk [vmem:[#allocation2 + $0x10] sm:$0xff] %vm382_vm2, %v727_v32  ;;  %v1646_v27 = vld [vmem:[%s2048_s4 + $0x8] sm:$0xff]  ;;  %v802_v31 = vld [vmem:[#allocation4] sm:$0xff] }
 0x166   : > { %v724_v36 = vpop.xlane.xlu1 %723 }
 0x167   : > { %v728_v37 = vmax.f32 %v1954_v33, %v724_v36  ;;  %v735_v59 = vmul.f32 1.442695, %v730_v34  ;;  %v737_v62 = vmul.f32 1.442695, %v731_v35  ;;  %v803_v34 = vld [vmem:[#allocation4 + $0x8] sm:$0xff] }
 0x169   : > { %753 = vperm.xlu1 %1772, %v727_v32   ;;  %v732_v38 = vsub.f32 %v1954_v33, %v728_v37  ;;  %1137 = vst.msk [vmem:[#allocation2 + $0x18] sm:$0xff] %vm382_vm2, %v728_v37 }
 0x16b   : > { %v739_v3 = vmul.f32 1.442695, %v732_v38 }
 0x16d   : > { %758 = vperm.xlu1 %1772, %v728_v37  }
 0x1dc   : > { %v744_v41 = vpop.permute.xlu0 %743 }
 0x1dd   : > { %v761_v42 = vsub.f32 %v477_v10, %v744_v41 }
 0x1df   : > { %v765_v43 = vmul.f32 1.442695, %v761_v42 }
 0x1e0   : > { %v749_v44 = vpop.permute.xlu1 %748 }
 0x1e1   : > { %1773 = vpow2.f32 %v765_v43  ;;  %v762_v45 = vsub.f32 %v553_v11, %v749_v44  ;;  %v774_v11 = vld [vmem:[#allocation3 + $0x8] sm:$0xff] }
 0x1e3   : > { %v767_v46 = vmul.f32 1.442695, %v762_v45  ;;  %v805_v45 = vld [vmem:[#allocation4 + $0x18] sm:$0xff] }
 0x1e4   : > { %v754_v47 = vpop.permute.xlu1 %753 }
 0x1e5   : > { %1775 = vpow2.f32 %v767_v46  ;;  %v763_v48 = vsub.f32 %v629_v16, %v754_v47 }
 0x1e7   : > { %v769_v49 = vmul.f32 1.442695, %v763_v48 }
 0x1e8   : > { %v759_v50 = vpop.permute.xlu1 %758 }
 0x1e9   : > { %1777 = vpow2.f32 %v769_v49  ;;  %v764_v51 = vsub.f32 %v705_v18, %v759_v50 }
 0x1eb   : > { %v771_v52 = vmul.f32 1.442695, %v764_v51 }
 0x1ed   : > { %1779 = vpow2.f32 %v771_v52 }
 0x1ee   : > { %v1774_v54 = vpop.eup %1773  ;;  %1781 = vpow2.f32 %v735_v59 }
 0x1ef   : > { %1706 = vmatmul.mubr.msk.f32.vlgmr.msra.gmra.mxu0 %vm391_vm0, %v1774_v54  ;;  %v781_v55 = vsel %vm391_vm0, %v1774_v54, 0.0  ;;  %1783 = vpow2.f32 %v737_v62 }
 0x1f0   : > { %782 = vadd.xlane.f32.xlu0 %v781_v55  ;;  %1714 = vmatpush3.msra.mxu0 %v832_v53  ;;  %1785 = vpow2.f32 %v733_v1 }
 0x1f1   : > { %1715 = vmatprep.mubr.msk.f32.mxu0 %vm1822_vm1, %v1821_v0  ;;  %1723 = vmatprep.subr.mxu0 %v1821_v0  ;;  %1787 = vpow2.f32 %v739_v3 }
 0x1f2   : > { %v1776_v57 = vpop.eup %1775 }
 0x1f3   : > { %1711 = vmatmul.mubr.msk.f32.vlgmr.msra.gmra.mxu1 %vm391_vm0, %v1776_v57  ;;  %v784_v58 = vsel %vm391_vm0, %v1776_v57, 0.0 }
 0x1f4   : > { %785 = vadd.xlane.f32.xlu1 %v784_v58  ;;  %1719 = vmatpush3.msra.mxu1 %v833_v56 }
 0x1f5   : > { %1720 = vmatprep.mubr.msk.f32.mxu1 %vm1822_vm1, %v1821_v0  ;;  %1728 = vmatprep.subr.mxu1 %v1821_v0 }
 0x1f6   : > { %v1778_v60 = vpop.eup %1777 }
 0x1f7   : > { %1716 = vmatmul.mubr.msk.f32.vlgmr.msra.gmra.mxu0 %vm391_vm0, %v1778_v60  ;;  %v787_v61 = vsel %vm391_vm0, %v1778_v60, 0.0 }
 0x1f8   : > { %788 = vadd.xlane.f32.xlu1 %v787_v61  ;;  %1725 = vmatprep.mubr.msk.f32.mxu0 %vm1822_vm1, %v1821_v0  ;;  %v1649_v61 = vld [vmem:[%s2048_s4 + $0x10] sm:$0xff] }
 0x1f9   : > { %1724 = vmatpush3.msra.mxu0 %v1646_v27 }
 0x1fa   : > { %v1780_v63 = vpop.eup %1779  ;;  %1733 = vmatprep.subr.mxu0 %v1821_v0 }
 0x1fb   : > { %1721 = vmatmul.mubr.msk.f32.vlgmr.msra.gmra.mxu1 %vm391_vm0, %v1780_v63  ;;  %v790_v2 = vsel %vm391_vm0, %v1780_v63, 0.0  ;;  %v1782_v4 = vpop.eup %1781 }
 0x1fc   : > { %791 = vadd.xlane.f32.xlu1 %v790_v2  ;;  %1730 = vmatprep.mubr.msk.f32.mxu1 %vm1822_vm1, %v1821_v0  ;;  %v1784_v5 = vpop.eup %1783  ;;  %v778_v13 = vmul.f32 %v1782_v4, %v774_v11  ;;  %v1651_v2 = vld [vmem:[%s2048_s4 + $0x18] sm:$0xff] }
 0x1fd   : > { %v1786_v6 = vpop.eup %1785  ;;  %v779_v17 = vmul.f32 %v1784_v5, %v775_v15  ;;  %1729 = vmatpush3.msra.mxu1 %v1177_v29 }
 0x1fe   : > { %v1788_v7 = vpop.eup %1787  ;;  %v777_v9 = vmul.f32 %v1786_v6, %v773_v8  ;;  %1738 = vmatprep.subr.mxu1 %v1821_v0 }
 0x1ff   : > { %v780_v21 = vmul.f32 %v1788_v7, %v776_v19  ;;  %v1653_v19 = vld [vmem:[%s2049_s5] ss:$0 sm:$0xff] }
 0x206   : > { %813 = vperm.xlu0 %1771, %v1782_v4  }
 0x20a   : > { %818 = vperm.xlu0 %1771, %v1784_v5  }
 0x20d   : > { %808 = vperm.xlu1 %1772, %v1786_v6  }
 0x20e   : > { %823 = vperm.xlu0 %1771, %v1788_v7  }
 0x279   : > { %v783_v10 = vpop.xlane.xlu0 %782 }
 0x27a   : > { %v793_v12 = vadd.f32 %v783_v10, %v777_v9 }
 0x27c   : > { %798 = vst.msk [vmem:[#allocation3] sm:$0xff] %vm382_vm2, %v793_v12 }
 0x27d   : > { %v786_v14 = vpop.xlane.xlu1 %785 }
 0x27e   : > { %v794_v16 = vadd.f32 %v786_v14, %v778_v13 }
 0x280   : > { %799 = vst.msk [vmem:[#allocation3 + $0x8] sm:$0xff] %vm382_vm2, %v794_v16 }
 0x281   : > { %v789_v18 = vpop.xlane.xlu1 %788  ;;  %v814_v30 = vpop.permute.xlu0 %813 }
 0x282   : > { %v795_v20 = vadd.f32 %v789_v18, %v779_v17  ;;  %v827_v39 = vmul.f32 %v814_v30, %v803_v34  ;;  %v1478_v17 = vld [vmem:[%s370_s26] sm:$0xff] }
 0x283   : > { %v1141_v25 = vld [vmem:[#allocation3] sm:$0xff] }
 0x284   : > { %800 = vst.msk [vmem:[#allocation3 + $0x10] sm:$0xff] %vm382_vm2, %v795_v20 }
 0x285   : > { %v792_v22 = vpop.xlane.xlu1 %791  ;;  %v819_v37 = vpop.permute.xlu0 %818 }
 0x286   : > { %v796_v23 = vadd.f32 %v792_v22, %v780_v21  ;;  %v828_v44 = vmul.f32 %v819_v37, %v804_v40 }
 0x287   : > { %v1142_v24 = vld [vmem:[#allocation3 + $0x8] sm:$0xff] }
 0x288   : > { %801 = vst.msk [vmem:[#allocation3 + $0x18] sm:$0xff] %vm382_vm2, %v796_v23  ;;  %1156 = vperm.xlu1 %1772, %v1142_v24  }
 0x289   : > { %v809_v32 = vpop.permute.xlu1 %808  ;;  %v824_v46 = vpop.permute.xlu0 %823 }
 0x28a   : > { %v826_v33 = vmul.f32 %v809_v32, %v802_v31  ;;  %v829_v50 = vmul.f32 %v824_v46, %v805_v45 }
 0x28b   : > { %v1143_v26 = vld [vmem:[#allocation3 + $0x10] sm:$0xff] }
 0x28c   : > { %1151 = vperm.xlu1 %1772, %v1141_v25  }
 0x28f   : > { %v1144_v28 = vld [vmem:[#allocation3 + $0x18] sm:$0xff] }
 0x290   : > { %1161 = vperm.xlu1 %1772, %v1143_v26  }
 0x294   : > { %1166 = vperm.xlu1 %1772, %v1144_v28  }
 0x2af   : > { %v903_v35 = vpop.f32.mrf.mxu0 }
 0x2b0   : > { %v1126_v36 = vadd.f32 %v903_v35, %v826_v33 }
 0x2b1   : > { %v1707_v38 = vpop.f32.mrf.mxu0 }
 0x2b2   : > { %1130 = vst.msk [vmem:[#allocation4] sm:$0xff] %vm391_vm0, %v1126_v36 }
 0x2b3   : > { %v976_v41 = vpop.f32.mrf.mxu1 }
 0x2b4   : > { %v1127_v42 = vadd.f32 %v976_v41, %v827_v39 }
 0x2b5   : > { %v1712_v43 = vpop.f32.mrf.mxu1 }
 0x2b6   : > { %1131 = vst.msk [vmem:[#allocation4 + $0x8] sm:$0xff] %vm391_vm0, %v1127_v42 }
 0x2b7   : > { %v1049_v47 = vpop.f32.mrf.mxu0 }
 0x2b8   : > { %v1128_v48 = vadd.f32 %v1049_v47, %v828_v44 }
 0x2b9   : > { %v1717_v49 = vpop.f32.mrf.mxu0  ;;  %v1145_v63 = vld [vmem:[#allocation4] sm:$0xff] }
 0x2ba   : > { %1132 = vst.msk [vmem:[#allocation4 + $0x10] sm:$0xff] %vm391_vm0, %v1128_v48 }
 0x2bb   : > { %v1122_v51 = vpop.f32.mrf.mxu1 }
 0x2bc   : > { %v1129_v52 = vadd.f32 %v1122_v51, %v829_v50 }
 0x2bd   : > { %v1722_v53 = vpop.f32.mrf.mxu1  ;;  %v1146_v59 = vld [vmem:[#allocation4 + $0x8] sm:$0xff] }
 0x2be   : > { %1133 = vst.msk [vmem:[#allocation4 + $0x18] sm:$0xff] %vm391_vm0, %v1129_v52 }
 0x2c1   : > { %v1147_v4 = vld [vmem:[#allocation4 + $0x10] sm:$0xff] }
 0x2c5   : > { %v1148_v7 = vld [vmem:[#allocation4 + $0x18] sm:$0xff] }
 0x303   : > { %v1157_v54 = vpop.permute.xlu1 %1156 }
 0x304   : > { %1789 = vrcp.f32 %v1157_v54 }
 0x307   : > { %v1152_v55 = vpop.permute.xlu1 %1151 }
 0x308   : > { %1791 = vrcp.f32 %v1152_v55 }
 0x30b   : > { %v1162_v56 = vpop.permute.xlu1 %1161 }
 0x30c   : > { %1793 = vrcp.f32 %v1162_v56 }
 0x30f   : > { %v1167_v57 = vpop.permute.xlu1 %1166 }
 0x310   : > { %1795 = vrcp.f32 %v1167_v57 }
 0x311   : > { %v1790_v58 = vpop.eup %1789 }
 0x312   : > { %v1172_v60 = vmul.f32 %v1790_v58, %v1146_v59 }
 0x314   : > { %1726 = vmatmul.mubr.msk.f32.vlgmr.msra.gmra.mxu0 %vm391_vm0, %v1172_v60 }
 0x315   : > { %v1792_v62 = vpop.eup %1791  ;;  %1734 = vmatpush3.msra.mxu0 %v1649_v61  ;;  %1735 = vmatprep.mubr.msk.f32.mxu0 %vm1822_vm1, %v1821_v0 }
 0x316   : > { %v1170_v1 = vmul.f32 %v1792_v62, %v1145_v63 }
 0x318   : > { %1731 = vmatmul.mubr.msk.f32.vlgmr.msra.gmra.mxu1 %vm391_vm0, %v1170_v1 }
 0x319   : > { %v1794_v3 = vpop.eup %1793  ;;  %1739 = vmatpush3.msra.mxu1 %v1651_v2  ;;  %1740 = vmatprep.mubr.msk.f32.mxu1 %vm1822_vm1, %v1821_v0 }
 0x31a   : > { %v1174_v5 = vmul.f32 %v1794_v3, %v1147_v4 }
 0x31c   : > { %1736 = vmatmul.mubr.msk.f32.vlgmr.msra.gmra.mxu0 %vm391_vm0, %v1174_v5 }
 0x31d   : > { %v1796_v6 = vpop.eup %1795 }
 0x31e   : > { %v1176_v8 = vmul.f32 %v1796_v6, %v1148_v7 }
 0x320   : > { %1741 = vmatmul.mubr.msk.f32.vlgmr.msra.gmra.mxu1 %vm391_vm0, %v1176_v8 }
 0x3d4   : > { %v1249_v9 = vpop.f32.mrf.mxu0 }
 0x3d6   : > { %v1727_v10 = vpop.f32.mrf.mxu0 }
 0x3d8   : > { %v1322_v11 = vpop.f32.mrf.mxu1 }
 0x3d9   : > { %v1323_v14 = vadd.f32 %v1322_v11, %v1249_v9 }
 0x3da   : > { %v1732_v12 = vpop.f32.mrf.mxu1 }
 0x3dc   : > { %v1397_v13 = vpop.f32.mrf.mxu0 }
 0x3dd   : > { %v1401_v15 = vadd.f32 %v1397_v13, %v1323_v14 }
 0x3de   : > { %v1737_v0 = vpop.f32.mrf.mxu0 }
 0x3e0   : > { %v1473_v16 = vpop.f32.mrf.mxu1 }
 0x3e1   : > { %v1477_v18 = vadd.f32 %v1473_v16, %v1401_v15 }
 0x3e2   : > { %v1742_v20 = vpop.f32.mrf.mxu1 }
 0x3e3   : > { %v1479_v21 = vadd.f32 %v1478_v17, %v1477_v18 }
 0x3e5   : > { %v1487_v22 = vadd.f32 %v1653_v19, %v1479_v21 }
 0x3e7   : > { %1489 = vst.msk [vmem:[%s377_s21] sm:$0xff] %vm1488_vm3, %v1487_v22 }
 0x3e8 PF: > { %s16_s23 = sadd.s32 1, %s1819_s23   ;;  %s2051_s21 = smov %s1815_s22 }
 0x3e9   : > { %p13_p5 = scmp.ge.s32.totalorder %s16_s23, 4   ;;  %s2052_s22 = smov %s2054_s24 }
 0x3eb   :  { %15 = sbr.rel (!%p13_p5) target bundleno = 2 (0x2), region = 94 }

</bundles_post_ra>
